<compile_context>
chip_gen: v7x
topology: tpu7x:2x2x1
jax: 0.10.0
libtpu: 0.0.40
codegen_flags: <defaults>
</compile_context>

<pallas_src>
import math

import jax
import jax.numpy as jnp
from jax.experimental import pallas as pl
from jax.experimental.pallas import tpu as pltpu

PATCH = 14        # dinov2-small patch size
HIDDEN = 384      # dinov2-small hidden size
LN_EPS = 1e-6     # Dinov2Config.layer_norm_eps


def _round_up(x, m):
    return (x + m - 1) // m * m


def _choose_token_tile(num_patches, cap=512):
    """Token tile: always a multiple of 128 (lane-dense transposed stores, full MXU rows),
    capped at 512 so the double-buffered working set stays well under v5e's 16 MiB scoped
    VMEM (and trivially under v6e/v7x limits)."""
    return min(cap, _round_up(num_patches, 128))


# ----------------------------------------------------------------------------
# Fused Pallas kernel: patch projection (MXU) + pos-embed(+bias) + LayerNorm
# with transposed (channel-major) store.
# ----------------------------------------------------------------------------
def _patch_embed_ln_kernel(p_ref, w_ref, pos_ref, g_ref, beta_ref, o_ref):
    # p_ref: (1, tp, K) bf16   w_ref: (K, 384) bf16   pos_ref: (tp, 384) bf16
    # g_ref/beta_ref: (1, 384) f32   o_ref: (1, 384, tp) f32
    acc = jnp.dot(p_ref[0], w_ref[...], preferred_element_type=jnp.float32)
    acc = acc + pos_ref[...].astype(jnp.float32)          # conv bias folded into pos
    mean = jnp.mean(acc, axis=-1, keepdims=True)
    var = jnp.mean(jnp.square(acc - mean), axis=-1, keepdims=True)  # biased, like LN
    y = (acc - mean) * jax.lax.rsqrt(var + LN_EPS)
    y = y * g_ref[...] + beta_ref[...]
    # Fuse the NHWC->NCHW permute: transposed store (XLU transpose, lane-dense 384 x tp).
    o_ref[0] = y.T.astype(o_ref.dtype)


def patch_embed_layernorm(patches_bf16, w_bf16, pos_bf16, gamma, beta, tp):
    """patches (B, Np_pad, K) bf16; w (K, 384) bf16; pos (Np_pad, 384) bf16;
    gamma/beta (1, 384) f32.  Returns (B, 384, Np_pad) f32 (channel-major)."""
    B, Np_pad, K = patches_bf16.shape
    # Token-block outer, batch inner: pos block index depends only on the outer axis,
    # so the pos tile stays resident across the batch loop (DMA'd once per token block).
    grid = (Np_pad // tp, B)
    return pl.pallas_call(
        _patch_embed_ln_kernel,
        out_shape=jax.ShapeDtypeStruct((B, HIDDEN, Np_pad), jnp.float32),
        grid=grid,
        in_specs=[
            pl.BlockSpec((1, tp, K), lambda p, b: (b, p, 0)),      # patches
            pl.BlockSpec((K, HIDDEN), lambda p, b: (0, 0)),        # projection weight
            pl.BlockSpec((tp, HIDDEN), lambda p, b: (p, 0)),       # pos embed (+bias), bf16
            pl.BlockSpec((1, HIDDEN), lambda p, b: (0, 0)),        # LN gamma
            pl.BlockSpec((1, HIDDEN), lambda p, b: (0, 0)),        # LN beta
        ],
        out_specs=pl.BlockSpec((1, HIDDEN, tp), lambda p, b: (b, 0, p)),
        compiler_params=pltpu.CompilerParams(
            dimension_semantics=("parallel", "parallel")),
    )(patches_bf16, w_bf16, pos_bf16, gamma, beta)


# ----------------------------------------------------------------------------
# Glue: patch extraction (pure layout change) and forward pass
# ----------------------------------------------------------------------------
def extract_patches(x_nchw):
    """(B, 3, H, W) -> (B, Np, 3*14*14), feature order (cin, kh, kw) to match
    PyTorch Conv2d weight.reshape(Cout, -1). Non-overlapping patches => no im2col
    read amplification."""
    B, C, H, W = x_nchw.shape
    assert H % PATCH == 0 and W % PATCH == 0, "dinov2 needs H, W multiples of 14"
    Hp, Wp = H // PATCH, W // PATCH
    x = x_nchw.reshape(B, C, Hp, PATCH, Wp, PATCH)
    x = jnp.transpose(x, (0, 2, 4, 1, 3, 5))           # (B, Hp, Wp, C, 14, 14)
    return x.reshape(B, Hp * Wp, C * PATCH * PATCH), Hp, Wp


def encoder_dinov2_small_forward(params, x_nchw):
    B = x_nchw.shape[0]
    patches, Hp, Wp = extract_patches(x_nchw.astype(jnp.bfloat16))
    Np = Hp * Wp
    K = patches.shape[-1]                               # 3*14*14 = 588, un-padded

    tp = _choose_token_tile(Np)
    Np_pad = _round_up(Np, tp)
    if Np_pad != Np:                                    # zero patches -> finite rows, sliced off
        patches = jnp.pad(patches, ((0, 0), (0, Np_pad - Np), (0, 0)))

    # PyTorch Conv2d weight (Cout, Cin, kh, kw) -> matmul weight (Cin*kh*kw, Cout)
    w = params["proj_w"].reshape(HIDDEN, K).T.astype(jnp.bfloat16)

    # Fold the conv bias into the position embedding (CLS slot dropped); store bf16.
    pos = params["pos_embed"][0, 1:, :] + params["proj_b"][None, :]
    if Np_pad != Np:
        pos = jnp.pad(pos, ((0, Np_pad - Np), (0, 0)))
    pos = pos.astype(jnp.bfloat16)

    gamma = params["ln_w"].reshape(1, HIDDEN)
    beta = params["ln_b"].reshape(1, HIDDEN)

    tokens_t = patch_embed_layernorm(patches, w, pos, gamma, beta, tp)  # (B, 384, Np_pad)
    # Output is already channel-major; drop padded tokens and view as the feature map.
    return tokens_t[:, :, :Np].reshape(B, HIDDEN, Hp, Wp)


# ----------------------------------------------------------------------------
# Synthetic deterministic parameters (no pretrained download)
# ----------------------------------------------------------------------------
def make_params(key, num_patches):
    ks = jax.random.split(key, 5)
    fan_in = 3 * PATCH * PATCH
    return dict(
        proj_w=jax.random.normal(ks[0], (HIDDEN, 3, PATCH, PATCH), jnp.float32)
        / math.sqrt(fan_in),
        proj_b=0.02 * jax.random.normal(ks[1], (HIDDEN,), jnp.float32),
        pos_embed=0.02 * jax.random.normal(ks[2], (1, num_patches + 1, HIDDEN),
                                           jnp.float32),
        ln_w=1.0 + 0.05 * jax.random.normal(ks[3], (HIDDEN,), jnp.float32),
        ln_b=0.05 * jax.random.normal(ks[4], (HIDDEN,), jnp.float32),
        # cls_token / mask_token / 12 transformer blocks exist in the PyTorch module but
        # have no effect on feature_maps[0]; they are not materialized.
    )


# ----------------------------------------------------------------------------
# Pure-JAX reference (bf16 matmul operands, f32 everything else) for validation
# ----------------------------------------------------------------------------
def reference_forward(params, x_nchw):
    patches, Hp, Wp = extract_patches(x_nchw.astype(jnp.bfloat16))
    B, Np, K = patches.shape
    w = params["proj_w"].reshape(HIDDEN, K).T.astype(jnp.bfloat16)
    acc = jnp.dot(patches, w, preferred_element_type=jnp.float32)
    acc = acc + params["proj_b"][None, None, :] + params["pos_embed"][:, 1:, :]
    mean = jnp.mean(acc, axis=-1, keepdims=True)
    var = jnp.mean(jnp.square(acc - mean), axis=-1, keepdims=True)
    y = (acc - mean) * jax.lax.rsqrt(var + LN_EPS)
    y = y * params["ln_w"] + params["ln_b"]
    return jnp.transpose(y.reshape(B, Hp, Wp, HIDDEN), (0, 3, 1, 2))


if __name__ == "__main__":
    key = jax.random.PRNGKey(0)
    B, H, W = 2, 112, 112                       # small multiple-of-14 resolution
    Np = (H // PATCH) * (W // PATCH)            # 8*8 = 64 patches per image
    params = make_params(key, Np)
    x = jax.random.normal(jax.random.fold_in(key, 99), (B, 3, H, W), jnp.float32)

    out = jax.block_until_ready(jax.jit(encoder_dinov2_small_forward)(params, x))
    assert out.shape == (B, HIDDEN, H // PATCH, W // PATCH), out.shape
    assert bool(jnp.all(jnp.isfinite(out)))

    ref = jax.block_until_ready(jax.jit(reference_forward)(params, x))
    max_err = float(jnp.max(jnp.abs(out - ref)))
    assert max_err < 2e-2, f"mismatch vs reference: {max_err}"

    print("KERNEL_OK")
</pallas_src>

<mosaic_0001>
module attributes {stable_mosaic.version = 11 : i64} {
  func.func @_patch_embed_ln_kernel(%arg0: i32, %arg1: i32, %arg2: memref<1x128x588xbf16, #tpu.memory_space<vmem>>, %arg3: memref<588x384xbf16, #tpu.memory_space<vmem>>, %arg4: memref<128x384xbf16, #tpu.memory_space<vmem>>, %arg5: memref<1x384xf32, #tpu.memory_space<vmem>>, %arg6: memref<1x384xf32, #tpu.memory_space<vmem>>, %arg7: memref<1x384x128xf32, #tpu.memory_space<vmem>>) attributes {dimension_semantics = [#tpu.dimension_semantics<parallel>, #tpu.dimension_semantics<parallel>], iteration_bounds = array<i64: 1, 2>, scalar_prefetch = 0 : i64, scratch_operands = 0 : i64, tpu.core_type = #tpu.core_type<tc>, window_params = [{transform_indices = @transform_0, window_bounds = array<i64: 1, 128, 588>}, {pipeline_mode = #tpu.pipeline_mode<synchronous>, transform_indices = @transform_1, window_bounds = array<i64: 588, 384>}, {transform_indices = @transform_2, window_bounds = array<i64: 128, 384>}, {pipeline_mode = #tpu.pipeline_mode<synchronous>, transform_indices = @transform_3, window_bounds = array<i64: 1, 384>}, {pipeline_mode = #tpu.pipeline_mode<synchronous>, transform_indices = @transform_4, window_bounds = array<i64: 1, 384>}, {transform_indices = @transform_5, window_bounds = array<i64: 1, 384, 128>}]} {
    %c0 = arith.constant 0 : index
    %c0_0 = arith.constant 0 : index
    %c0_1 = arith.constant 0 : index
    %0 = vector.load %arg2[%c0, %c0_0, %c0_1] : memref<1x128x588xbf16, #tpu.memory_space<vmem>>, vector<1x128x588xbf16>
    %1 = vector.shape_cast %0 : vector<1x128x588xbf16> to vector<128x588xbf16>
    %c0_2 = arith.constant 0 : index
    %c0_3 = arith.constant 0 : index
    %2 = vector.load %arg3[%c0_2, %c0_3] : memref<588x384xbf16, #tpu.memory_space<vmem>>, vector<588x384xbf16>
    %cst = arith.constant dense<0.000000e+00> : vector<128x384xf32>
    %3 = tpu.matmul %1, %2, %cst {dimension_numbers = #tpu.dot_dimension_numbers<[1], [0], [0], [1], [0, 0, 1, 1], [], []>} : vector<128x588xbf16>, vector<588x384xbf16>, vector<128x384xf32> -> vector<128x384xf32>
    %c0_4 = arith.constant 0 : index
    %c0_5 = arith.constant 0 : index
    %4 = vector.load %arg4[%c0_4, %c0_5] : memref<128x384xbf16, #tpu.memory_space<vmem>>, vector<128x384xbf16>
    %5 = arith.extf %4 : vector<128x384xbf16> to vector<128x384xf32>
    %6 = arith.addf %3, %5 : vector<128x384xf32>
    %cst_6 = arith.constant dense<0.000000e+00> : vector<128xf32>
    %7 = vector.multi_reduction <add>, %6, %cst_6 [1] : vector<128x384xf32> to vector<128xf32>
    %8 = vector.shape_cast %7 : vector<128xf32> to vector<128x1xf32>
    %cst_7 = arith.constant 3.840000e+02 : f32
    %9 = vector.broadcast %cst_7 : f32 to vector<128x1xf32>
    %10 = arith.divf %8, %9 : vector<128x1xf32>
    %11 = vector.broadcast %10 : vector<128x1xf32> to vector<128x384xf32>
    %12 = arith.subf %6, %11 : vector<128x384xf32>
    %13 = arith.mulf %12, %12 : vector<128x384xf32>
    %cst_8 = arith.constant dense<0.000000e+00> : vector<128xf32>
    %14 = vector.multi_reduction <add>, %13, %cst_8 [1] : vector<128x384xf32> to vector<128xf32>
    %15 = vector.shape_cast %14 : vector<128xf32> to vector<128x1xf32>
    %cst_9 = arith.constant 3.840000e+02 : f32
    %16 = vector.broadcast %cst_9 : f32 to vector<128x1xf32>
    %17 = arith.divf %15, %16 : vector<128x1xf32>
    %18 = vector.broadcast %10 : vector<128x1xf32> to vector<128x384xf32>
    %19 = arith.subf %6, %18 : vector<128x384xf32>
    %cst_10 = arith.constant 9.99999997E-7 : f32
    %20 = vector.broadcast %cst_10 : f32 to vector<128x1xf32>
    %21 = arith.addf %17, %20 : vector<128x1xf32>
    %22 = math.rsqrt %21 : vector<128x1xf32>
    %23 = vector.broadcast %22 : vector<128x1xf32> to vector<128x384xf32>
    %24 = arith.mulf %19, %23 : vector<128x384xf32>
    %c0_11 = arith.constant 0 : index
    %c0_12 = arith.constant 0 : index
    %25 = vector.load %arg5[%c0_11, %c0_12] : memref<1x384xf32, #tpu.memory_space<vmem>>, vector<1x384xf32>
    %26 = vector.broadcast %25 : vector<1x384xf32> to vector<128x384xf32>
    %27 = arith.mulf %24, %26 : vector<128x384xf32>
    %c0_13 = arith.constant 0 : index
    %c0_14 = arith.constant 0 : index
    %28 = vector.load %arg6[%c0_13, %c0_14] : memref<1x384xf32, #tpu.memory_space<vmem>>, vector<1x384xf32>
    %29 = vector.broadcast %28 : vector<1x384xf32> to vector<128x384xf32>
    %30 = arith.addf %27, %29 : vector<128x384xf32>
    %31 = tpu.transpose %30, [1, 0] : vector<128x384xf32> -> vector<384x128xf32>
    %c0_15 = arith.constant 0 : index
    %c0_16 = arith.constant 0 : index
    %c0_17 = arith.constant 0 : index
    %32 = vector.load %arg7[%c0_15, %c0_16, %c0_17] : memref<1x384x128xf32, #tpu.memory_space<vmem>>, vector<1x384x128xf32>
    %33 = vector.shape_cast %32 : vector<1x384x128xf32> to vector<384x128xf32>
    %34 = vector.shape_cast %31 : vector<384x128xf32> to vector<1x384x128xf32>
    tpu.vector_store %arg7[%c0_15, %c0_16, %c0_17], %34 {strides = array<i32>} : memref<1x384x128xf32, #tpu.memory_space<vmem>>, vector<1x384x128xf32>,
    return
  }
  func.func @transform_0(%arg0: i32, %arg1: i32) -> (i32, i32, i32) {
    %c0_i32 = arith.constant 0 : i32
    %c0_i32_0 = arith.constant 0 : i32
    return %arg1, %arg0, %c0_i32 : i32, i32, i32
  }
  func.func @transform_1(%arg0: i32, %arg1: i32) -> (i32, i32) {
    %c0_i32 = arith.constant 0 : i32
    %c0_i32_0 = arith.constant 0 : i32
    %c0_i32_1 = arith.constant 0 : i32
    return %c0_i32, %c0_i32_0 : i32, i32
  }
  func.func @transform_2(%arg0: i32, %arg1: i32) -> (i32, i32) {
    %c0_i32 = arith.constant 0 : i32
    %c0_i32_0 = arith.constant 0 : i32
    return %arg0, %c0_i32 : i32, i32
  }
  func.func @transform_3(%arg0: i32, %arg1: i32) -> (i32, i32) {
    %c0_i32 = arith.constant 0 : i32
    %c0_i32_0 = arith.constant 0 : i32
    %c0_i32_1 = arith.constant 0 : i32
    return %c0_i32, %c0_i32_0 : i32, i32
  }
  func.func @transform_4(%arg0: i32, %arg1: i32) -> (i32, i32) {
    %c0_i32 = arith.constant 0 : i32
    %c0_i32_0 = arith.constant 0 : i32
    %c0_i32_1 = arith.constant 0 : i32
    return %c0_i32, %c0_i32_0 : i32, i32
  }
  func.func @transform_5(%arg0: i32, %arg1: i32) -> (i32, i32, i32) {
    %c0_i32 = arith.constant 0 : i32
    %c0_i32_0 = arith.constant 0 : i32
    return %arg1, %c0_i32, %arg0 : i32, i32, i32
  }
}

</mosaic_0001>

<bundles_post_ra>
// kernel: encoder_dinov2_small_forward.1
= control target key start
LH: loop header
LB: loop body
LE: loop exit
PB: predicated region body
PF: predicated region fallthrough
CT: control target
= control target key end

     0   :  { %s3503_s18 = smov 0   ;;  %s3505_s19 = smov 0   ;;  %s4920_s0 = inlined_call_operand.vmem [shape: bf16[2,128,588], index: 0, kind: input, shape index: {}]   ;;  %s4921_s1 = inlined_call_operand.vmem [shape: bf16[588,384], index: 1, kind: input, shape index: {}]   ;;  %s4922_s2 = inlined_call_operand.vmem [shape: bf16[128,384], index: 2, kind: input, shape index: {}]   ;;  %s4923_s3 = inlined_call_operand.vmem [shape: f32[1,384], index: 3, kind: input, shape index: {}]   ;;  %s4924_s4 = inlined_call_operand.vmem [shape: f32[1,384], index: 4, kind: input, shape index: {}]   ;;  %s4925_s5 = inlined_call_operand.vmem [shape: f32[2,384,128], index: 5, kind: output, shape index: {}]  }
   0x1   :  { %s3507_s20 = smov 0  }
   0x2 LB: > { %s24_s21 = sadd.s32 1, %s3466_s19  ;;  %p2738_p0 = scmp.ge.s32.totalorder %s3470_s20, 1  ;;  %s3470_s20 = sphi %s3507_s20, %s15_s20   ;;  %s3466_s19 = sphi %s3505_s19, %s4971_s19   ;;  %s3462_s18 = sphi %s3503_s18, %s4970_s18  }
   0x3   : > { %p25_p1 = scmp.ge.s32.totalorder %s24_s21, 2  ;;  %p221_p2 = scmp.lt.s32.totalorder %s3470_s20, 3 }
   0x5   : > { %s4973_s21 = smov (%p25_p1, %s24_s21), 0  ;;  %p222_p3 = pnand %p2738_p0, %p221_p2 }
   0x7   : > { %225 = sbr.rel (%p222_p3) target bundleno = 1030 (0x406), region = 40 }
   0xe   : > { %v3212_v0 = vld [vmem:[%s4921_s1 + $0x4] ss:$12 sps:$4 sm:$0xff]   ;;  %v3472_v2 = vmov 0   ;;  %p264_p4 = scmp.lt.s32.totalorder %s3462_s18, 1  ;;  %v3216_v3 = vld [vmem:[%s4921_s1] ss:$12 sps:$4 sm:$0xff]  }
   0xf   : > { %v3527_v1 = vld [vmem:[%s4921_s1 + $0x304] ss:$12 sps:$4 sm:$0xff]   ;;  %1688 = vmatprep.mubr.bf16.mxu1 %v3472_v2  ;;  %1390 = vmatprep.subr.bf16.mxu0 %v3212_v0  ;;  %v3536_v4 = vld [vmem:[%s4921_s1 + $0x300] ss:$12 sps:$4 sm:$0xff]   ;;  %v3218_v5 = vld [vmem:[%s4921_s1 + $0x1c] ss:$12 sps:$4 sm:$0xff]  }
  0x10   : > { %3078 = vmatprep.subr.bf16.mxu1 %v3527_v1  ;;  %1391 = vmatpush1.bf16.msra.mxu0 %v3216_v3  ;;  %v3546_v6 = vld [vmem:[%s4921_s1 + $0x31c] ss:$12 sps:$4 sm:$0xff]   ;;  %v3222_v7 = vld [vmem:[%s4921_s1 + $0x18] ss:$12 sps:$4 sm:$0xff]   ;;  %s4975_s18 = smov (!%p264_p4, %s3462_s18), 1  ;;  %vm1380_vm0 = vcmask 1045504  }
  0x11   : > { %3083 = vmatpush1.bf16.msra.mxu1 %v3536_v4  ;;  %1392 = vmatprep.subr.bf16.mxu0 %v3218_v5  ;;  %v3554_v8 = vld [vmem:[%s4921_s1 + $0x318] ss:$12 sps:$4 sm:$0xff]   ;;  %v3224_v9 = vld [vmem:[%s4921_s1 + $0x34] ss:$12 sps:$4 sm:$0xff]   ;;  %v3228_v11 = vld [vmem:[%s4921_s1 + $0x30] ss:$12 sps:$4 sm:$0xff]  }
  0x12   : > { %3079 = vmatprep.subr.bf16.mxu1 %v3546_v6  ;;  %v3565_v10 = vld [vmem:[%s4921_s1 + $0x334] ss:$12 sps:$4 sm:$0xff]   ;;  %v3573_v12 = vld [vmem:[%s4921_s1 + $0x330] ss:$12 sps:$4 sm:$0xff]   ;;  %v3230_v13 = vld [vmem:[%s4921_s1 + $0x4c] ss:$12 sps:$4 sm:$0xff]  }
  0x13   : > { %v3583_v14 = vld [vmem:[%s4921_s1 + $0x34c] ss:$12 sps:$4 sm:$0xff]   ;;  %s3185_s29 = smul.u32 320, %s4975_s18  ;;  %v3234_v15 = vld [vmem:[%s4921_s1 + $0x48] ss:$12 sps:$4 sm:$0xff]   ;;  %vm1355_vm1 = vcmask 621568  }
  0x14   : > { %1393 = vmatpush1.bf16.msra.mxu0 %v3222_v7  ;;  %v3592_v16 = vld [vmem:[%s4921_s1 + $0x348] ss:$12 sps:$4 sm:$0xff]   ;;  %v3598_v17 = vld [vmem:[%s4921_s1 + $0x364] ss:$12 sps:$4 sm:$0x3f]   ;;  %s3186_s10 = smul.u32 384, %s4975_s18 }
  0x15   : > { %3084 = vmatpush1.bf16.msra.mxu1 %v3554_v8  ;;  %1394 = vmatprep.subr.bf16.mxu0 %v3224_v9  ;;  %v3236_v18 = vld [vmem:[%s4921_s1 + $0x64] ss:$12 sps:$4 sm:$0xff]   ;;  %v3241_v19 = vld [vmem:[%s4921_s1 + $0x360] ss:$12 sps:$4 sm:$0x3f]   ;;  %s3610_s17 = scalar_lea.vmem %s4920_s0, %s3185_s29 }
  0x16   : > { %3080 = vmatprep.subr.bf16.mxu1 %v3565_v10  ;;  %v3240_v20 = vld [vmem:[%s4921_s1 + $0x60] ss:$12 sps:$4 sm:$0xff]   ;;  %v3617_v21 = vsel %vm1380_vm0, %v3241_v19, 0  ;;  %v3242_v22 = vld [vmem:[%s4921_s1 + $0x7c] ss:$12 sps:$4 sm:$0xff]   ;;  %s4861_s13 = scalar_lea.vmem %s4925_s5, %s3186_s10 }
  0x17   : > { %v3245_v23 = vld [vmem:[%s4921_s1 + $0xc8] ss:$12 sps:$4 sm:$0xff]   ;;  %v3628_v24 = vld [vmem:[%s3610_s17 + $0xb0] ss:$20 sps:$4 sm:$0xff]   ;;  %v3250_v28 = vld [vmem:[%s4921_s1 + $0xe0] ss:$12 sps:$4 sm:$0xff]  }
  0x18   : > { %1395 = vmatpush1.bf16.msra.mxu0 %v3228_v11  ;;  %v3246_v25 = vld [vmem:[%s4921_s1 + $0x78] ss:$12 sps:$4 sm:$0xff]   ;;  %v3247_v26 = vld [vmem:[%s4921_s1 + $0x8] ss:$12 sps:$4 sm:$0xff]   ;;  %v3251_v29 = vld [vmem:[%s4921_s1 + $0x90] ss:$12 sps:$4 sm:$0xff]  }
  0x19   : > { %3085 = vmatpush1.bf16.msra.mxu1 %v3573_v12  ;;  %1396 = vmatprep.subr.bf16.mxu0 %v3230_v13  ;;  %v3248_v27 = vld [vmem:[%s4921_s1 + $0x94] ss:$12 sps:$4 sm:$0xff]   ;;  %v3253_v31 = vld [vmem:[%s4921_s1 + $0xac] ss:$12 sps:$4 sm:$0xff]   ;;  %v3259_v36 = vld [vmem:[%s4921_s1 + $0xc4] ss:$12 sps:$4 sm:$0xff]  }
  0x1a   : > { %3081 = vmatprep.subr.bf16.mxu1 %v3583_v14  ;;  %v3252_v30 = vld [vmem:[%s4921_s1 + $0x20] ss:$12 sps:$4 sm:$0xff]   ;;  %v3256_v32 = vld [vmem:[%s4921_s1 + $0xf8] ss:$12 sps:$4 sm:$0xff]   ;;  %v3257_v34 = vld [vmem:[%s4921_s1 + $0xa8] ss:$12 sps:$4 sm:$0xff]  }
  0x1b   : > { %v3659_v33 = vld [vmem:[%s3610_s17 + $0xd8] ss:$20 sps:$4 sm:$0xff]   ;;  %v3261_v37 = vld [vmem:[%s4921_s1 + $0x110] ss:$12 sps:$4 sm:$0xff]   ;;  %v3685_v41 = vld [vmem:[%s3610_s17 + $0x100] ss:$20 sps:$4 sm:$0xff]  }
  0x1c   : > { %1397 = vmatpush1.bf16.msra.mxu0 %v3234_v15  ;;  %v3258_v35 = vld [vmem:[%s4921_s1 + $0x38] ss:$12 sps:$4 sm:$0xff]   ;;  %v3262_v38 = vld [vmem:[%s4921_s1 + $0xc0] ss:$12 sps:$4 sm:$0xff]   ;;  %v3263_v39 = vld [vmem:[%s4921_s1 + $0x50] ss:$12 sps:$4 sm:$0xff]  }
  0x1d   : > { %3086 = vmatpush1.bf16.msra.mxu1 %v3592_v16  ;;  %1398 = vmatprep.subr.bf16.mxu0 %v3236_v18  ;;  %v3264_v40 = vld [vmem:[%s4921_s1 + $0xdc] ss:$12 sps:$4 sm:$0xff]   ;;  %v3268_v43 = vld [vmem:[%s4921_s1 + $0xd8] ss:$12 sps:$4 sm:$0xff]   ;;  %v3270_v45 = vld [vmem:[%s4921_s1 + $0xf4] ss:$12 sps:$4 sm:$0xff]  }
  0x1e   : > { %3082 = vmatprep.subr.msk.bf16.mxu1 %vm1380_vm0, %v3598_v17  ;;  %v3267_v42 = vld [vmem:[%s4921_s1 + $0x128] ss:$12 sps:$4 sm:$0xff]   ;;  %v3272_v46 = vld [vmem:[%s4921_s1 + $0x140] ss:$12 sps:$4 sm:$0xff]   ;;  %v3273_v47 = vld [vmem:[%s4921_s1 + $0xf0] ss:$12 sps:$4 sm:$0xff]  }
  0x1f   : > { %v3269_v44 = vld [vmem:[%s4921_s1 + $0x68] ss:$12 sps:$4 sm:$0xff]   ;;  %v3274_v48 = vld [vmem:[%s4921_s1 + $0x80] ss:$12 sps:$4 sm:$0xff]   ;;  %v3278_v51 = vld [vmem:[%s4921_s1 + $0x158] ss:$12 sps:$4 sm:$0xff]  }
  0x20   : > { %1399 = vmatpush1.bf16.msra.mxu0 %v3240_v20  ;;  %v3275_v49 = vld [vmem:[%s4921_s1 + $0x10c] ss:$12 sps:$4 sm:$0xff]   ;;  %v3715_v50 = vld [vmem:[%s3610_s17 + $0x128] ss:$20 sps:$4 sm:$0xff]   ;;  %v3281_v54 = vld [vmem:[%s4921_s1 + $0x124] ss:$12 sps:$4 sm:$0xff]  }
  0x21   : > { %3087 = vmatpush1.bf16.msra.mxu1 %v3617_v21  ;;  %1400 = vmatprep.subr.bf16.mxu0 %v3242_v22  ;;  %v3279_v52 = vld [vmem:[%s4921_s1 + $0x108] ss:$12 sps:$4 sm:$0xff]   ;;  %v3280_v53 = vld [vmem:[%s4921_s1 + $0x98] ss:$12 sps:$4 sm:$0xff]   ;;  %v3283_v55 = vld [vmem:[%s4921_s1 + $0x170] ss:$12 sps:$4 sm:$0xff]  }
  0x22   : > { %2911 = vmatprep.subr.bf16.mxu1 %v3245_v23  ;;  %v3288_v56 = vld [vmem:[%s3610_s17 + $0x4] ss:$20 sps:$4 sm:$0xff]   ;;  %v3284_v57 = vld [vmem:[%s4921_s1 + $0x120] ss:$12 sps:$4 sm:$0xff]   ;;  %v3285_v58 = vld [vmem:[%s4921_s1 + $0xb0] ss:$12 sps:$4 sm:$0xff]  }
  0x23   : > { %1422 = vmatprep.mubr.bf16.mxu0 %v3288_v56  ;;  %v3289_v59 = vld [vmem:[%s4921_s1 + $0x13c] ss:$12 sps:$4 sm:$0xff]   ;;  %v3286_v60 = vld [vmem:[%s3610_s17] ss:$20 sps:$4 sm:$0xff]   ;;  %v3291_v61 = vld [vmem:[%s4921_s1 + $0x138] ss:$12 sps:$4 sm:$0xff]  }
  0x24   : > { %2897 = vmatmul.mubr.msk.bf16.vlgmr.msra.gmra.mrb[0].mxu1 %vm1355_vm1, %v3628_v24  ;;  %1401 = vmatpush1.bf16.msra.mxu0 %v3246_v25  ;;  %v3295_v62 = vld [vmem:[%s3610_s17 + $0x2c] ss:$20 sps:$4 sm:$0xff]   ;;  %v3294_v0 = vld [vmem:[%s4921_s1 + $0x150] ss:$12 sps:$4 sm:$0xff]   ;;  %v3310_v3 = vld [vmem:[%s4921_s1 + $0x248] ss:$12 sps:$4 sm:$0xff]  }
  0x25   : > { %2912 = vmatpush3.bf16.msra.mxu1 %v3247_v26  ;;  %1402 = vmatprep.subr.bf16.mxu0 %v3248_v27  ;;  %v3292_v63 = vld [vmem:[%s4921_s1 + $0x154] ss:$12 sps:$4 sm:$0xff]   ;;  %v3297_v7 = vld [vmem:[%s4921_s1 + $0x16c] ss:$12 sps:$4 sm:$0xff]   ;;  %v3299_v9 = vld [vmem:[%s3610_s17 + $0x28] ss:$20 sps:$4 sm:$0xff]  }
  0x26   : > { %2913 = vmatprep.subr.bf16.mxu1 %v3250_v28  ;;  %1698 = vmatprep.mubr.bf16.mxu1 %v3472_v2  ;;  %v3311_v5 = vld [vmem:[%s4921_s1 + $0x188] ss:$12 sps:$4 sm:$0xff]   ;;  %v3303_v13 = vld [vmem:[%s4921_s1 + $0x184] ss:$12 sps:$4 sm:$0xff]   ;;  %v3321_v18 = vld [vmem:[%s4921_s1 + $0x260] ss:$12 sps:$4 sm:$0xff]  }
  0x27   : > { %v3300_v11 = vld [vmem:[%s4921_s1 + $0x168] ss:$12 sps:$4 sm:$0xff]   ;;  %v3322_v19 = vld [vmem:[%s4921_s1 + $0x1a0] ss:$12 sps:$4 sm:$0xff]   ;;  %v3306_v23 = vld [vmem:[%s4921_s1 + $0x198] ss:$12 sps:$4 sm:$0xff]  }
  0x28   : > { %1403 = vmatpush1.bf16.msra.mxu0 %v3251_v29  ;;  %v3304_v15 = vld [vmem:[%s3610_s17 + $0x54] ss:$20 sps:$4 sm:$0xff]   ;;  %v3301_v20 = vld [vmem:[%s4921_s1 + $0x180] ss:$12 sps:$4 sm:$0xff]   ;;  %v3309_v25 = vld [vmem:[%s3610_s17 + $0x50] ss:$20 sps:$4 sm:$0xff]  }
  0x29   : > { %2914 = vmatpush3.bf16.msra.mxu1 %v3252_v30  ;;  %1404 = vmatprep.subr.bf16.mxu0 %v3253_v31  ;;  %v3308_v22 = vld [vmem:[%s4921_s1 + $0x19c] ss:$12 sps:$4 sm:$0xff]   ;;  %v3332_v27 = vld [vmem:[%s4921_s1 + $0x278] ss:$12 sps:$4 sm:$0xff]   ;;  %v3314_v29 = vld [vmem:[%s4921_s1 + $0x1b4] ss:$12 sps:$4 sm:$0xff]  }
  0x2a   : > { %2915 = vmatprep.subr.bf16.mxu1 %v3256_v32  ;;  %v3315_v26 = vld [vmem:[%s3610_s17 + $0x7c] ss:$20 sps:$4 sm:$0xff]   ;;  %v3333_v28 = vld [vmem:[%s4921_s1 + $0x1b8] ss:$12 sps:$4 sm:$0xff]  }
  0x2b   : > { %v3312_v30 = vld [vmem:[%s4921_s1 + $0x1b0] ss:$12 sps:$4 sm:$0xff]   ;;  %v3319_v31 = vld [vmem:[%s4921_s1 + $0x1cc] ss:$12 sps:$4 sm:$0xff]  }
  0x2c   : > { %2898 = vmatmul.mubr.msk.bf16.gmra.mrb[4].mxu1 %vm1355_vm1, %v3659_v33  ;;  %1405 = vmatpush1.bf16.msra.mxu0 %v3257_v34  ;;  %v3343_v32 = vld [vmem:[%s4921_s1 + $0x290] ss:$12 sps:$4 sm:$0xff]  }
  0x2d   : > { %2916 = vmatpush3.bf16.msra.mxu1 %v3258_v35  ;;  %1406 = vmatprep.subr.bf16.mxu0 %v3259_v36  ;;  %v3344_v34 = vld [vmem:[%s4921_s1 + $0x1d0] ss:$12 sps:$4 sm:$0xff]   ;;  %v3317_v35 = vld [vmem:[%s4921_s1 + $0x1c8] ss:$12 sps:$4 sm:$0xff]   ;;  %v3320_v36 = vld [vmem:[%s3610_s17 + $0x78] ss:$20 sps:$4 sm:$0xff]  }
  0x2e   : > { %2917 = vmatprep.subr.bf16.mxu1 %v3261_v37  ;;  %1708 = vmatprep.mubr.bf16.mxu1 %v3472_v2  ;;  %v3326_v37 = vld [vmem:[%s3610_s17 + $0xa4] ss:$20 sps:$4 sm:$0xff]  }
  0x30   : > { %1407 = vmatpush1.bf16.msra.mxu0 %v3262_v38  ;;  %v3325_v38 = vld [vmem:[%s4921_s1 + $0x1e4] ss:$12 sps:$4 sm:$0xff]  }
  0x31   : > { %2918 = vmatpush3.bf16.msra.mxu1 %v3263_v39  ;;  %1408 = vmatprep.subr.bf16.mxu0 %v3264_v40  ;;  %v3323_v39 = vld [vmem:[%s4921_s1 + $0x1e0] ss:$12 sps:$4 sm:$0xff]   ;;  %v3354_v40 = vld [vmem:[%s4921_s1 + $0x2a8] ss:$12 sps:$4 sm:$0xff]  }
  0x32   : > { %2919 = vmatprep.subr.bf16.mxu1 %v3267_v42  ;;  %v3355_v42 = vld [vmem:[%s4921_s1 + $0x1e8] ss:$12 sps:$4 sm:$0xff]  }
  0x34   : > { %2899 = vmatmul.mubr.msk.bf16.gmra.mrb[8].mxu1 %vm1355_vm1, %v3685_v41  ;;  %1409 = vmatpush1.bf16.msra.mxu0 %v3268_v43  ;;  %v3330_v43 = vld [vmem:[%s4921_s1 + $0x1fc] ss:$12 sps:$4 sm:$0xff]  }
  0x35   : > { %2920 = vmatpush3.bf16.msra.mxu1 %v3269_v44  ;;  %1410 = vmatprep.subr.bf16.mxu0 %v3270_v45  ;;  %v3331_v44 = vld [vmem:[%s3610_s17 + $0xa0] ss:$20 sps:$4 sm:$0xff]   ;;  %v3328_v45 = vld [vmem:[%s4921_s1 + $0x1f8] ss:$12 sps:$4 sm:$0xff]  }
  0x36   : > { %2921 = vmatprep.subr.bf16.mxu1 %v3272_v46  ;;  %1718 = vmatprep.mubr.bf16.mxu1 %v3472_v2  ;;  %v3359_v46 = vld [vmem:[%s4921_s1 + $0x2c0] ss:$12 sps:$4 sm:$0xff]  }
  0x38   : > { %1411 = vmatpush1.bf16.msra.mxu0 %v3273_v47  ;;  %v3360_v47 = vld [vmem:[%s4921_s1 + $0x200] ss:$12 sps:$4 sm:$0xff]  }
  0x39   : > { %2922 = vmatpush3.bf16.msra.mxu1 %v3274_v48  ;;  %1412 = vmatprep.subr.bf16.mxu0 %v3275_v49  ;;  %v3337_v48 = vld [vmem:[%s3610_s17 + $0xcc] ss:$20 sps:$4 sm:$0xff]  }
  0x3a   : > { %2923 = vmatprep.subr.bf16.mxu1 %v3278_v51  ;;  %v3336_v49 = vld [vmem:[%s4921_s1 + $0x214] ss:$12 sps:$4 sm:$0xff]   ;;  %v3334_v51 = vld [vmem:[%s4921_s1 + $0x210] ss:$12 sps:$4 sm:$0xff]  }
  0x3c   : > { %2900 = vmatmul.mubr.msk.bf16.gmra.mrb[12].mxu1 %vm1355_vm1, %v3715_v50  ;;  %1413 = vmatpush1.bf16.msra.mxu0 %v3279_v52  ;;  %v3367_v52 = vld [vmem:[%s4921_s1 + $0x2d8] ss:$12 sps:$4 sm:$0xff]  }
  0x3d   : > { %2924 = vmatpush3.bf16.msra.mxu1 %v3280_v53  ;;  %1414 = vmatprep.subr.bf16.mxu0 %v3281_v54  ;;  %v3368_v53 = vld [vmem:[%s4921_s1 + $0x218] ss:$12 sps:$4 sm:$0xff]  }
  0x3e   : > { %2925 = vmatprep.subr.bf16.mxu1 %v3283_v55  ;;  %1761 = vmatprep.mubr.bf16.mxu1 %v3288_v56  ;;  %v3341_v54 = vld [vmem:[%s4921_s1 + $0x22c] ss:$12 sps:$4 sm:$0xff]   ;;  %v3342_v55 = vld [vmem:[%s3610_s17 + $0xc8] ss:$20 sps:$4 sm:$0xff]  }
  0x3f   : > { %v3339_v56 = vld [vmem:[%s4921_s1 + $0x228] ss:$12 sps:$4 sm:$0xff]  }
  0x40   : > { %1415 = vmatpush1.bf16.msra.mxu0 %v3284_v57  ;;  %v3372_v57 = vld [vmem:[%s4921_s1 + $0x2f0] ss:$12 sps:$4 sm:$0xff]  }
  0x41   : > { %2926 = vmatpush3.bf16.msra.mxu1 %v3285_v58  ;;  %1416 = vmatprep.subr.bf16.mxu0 %v3289_v59  ;;  %v3373_v58 = vld [vmem:[%s4921_s1 + $0x230] ss:$12 sps:$4 sm:$0xff]   ;;  %v3348_v59 = vld [vmem:[%s3610_s17 + $0xf4] ss:$20 sps:$4 sm:$0xff]  }
  0x42   : > { %2975 = vmatprep.subr.bf16.mxu1 %v3310_v3  ;;  %v3361_v3 = vld [vmem:[%s3610_s17 + $0x11c] ss:$20 sps:$4 sm:$0xff]  }
  0x44   : > { %1762 = vmatmul.mubr.bf16.vlgmr.msra.gmra.mrb[16].mxu1 %v3286_v60  ;;  %1417 = vmatpush1.bf16.msra.mxu0 %v3291_v61  ;;  %v3345_v61 = vld [vmem:[%s4921_s1 + $0x240] ss:$12 sps:$4 sm:$0xff]  }
  0x45   : > { %1769 = vmatprep.mubr.bf16.mxu1 %v3295_v62  ;;  %1418 = vmatprep.subr.bf16.mxu0 %v3292_v63  ;;  %v3350_v63 = vld [vmem:[%s4921_s1 + $0x258] ss:$12 sps:$4 sm:$0xff]  }
  0x46   : > { %2976 = vmatpush3.bf16.msra.mxu1 %v3311_v5  ;;  %v3392_v5 = vld [vmem:[%s4921_s1 + $0x308] ss:$12 sps:$4 sm:$0xff]  }
  0x47   : > { %2977 = vmatprep.subr.bf16.mxu1 %v3321_v18  ;;  %v3376_v18 = vld [vmem:[%s3610_s17 + $0xc] ss:$20 sps:$4 sm:$0xff]  }
  0x48   : > { %1419 = vmatpush1.bf16.msra.mxu0 %v3294_v0  ;;  %v3353_v0 = vld [vmem:[%s3610_s17 + $0xf0] ss:$20 sps:$4 sm:$0xff]  }
  0x49   : > { %1420 = vmatprep.subr.bf16.mxu0 %v3297_v7  ;;  %v3358_v7 = vld [vmem:[%s4921_s1 + $0x274] ss:$12 sps:$4 sm:$0xff]  }
  0x4a   : > { %2978 = vmatpush3.bf16.msra.mxu1 %v3322_v19  ;;  %v3371_v19 = vld [vmem:[%s4921_s1 + $0x2a4] ss:$12 sps:$4 sm:$0xff]  }
  0x4b   : > { %2979 = vmatprep.subr.bf16.mxu1 %v3332_v27  ;;  %v3382_v27 = vld [vmem:[%s4921_s1 + $0x2d4] ss:$12 sps:$4 sm:$0xff]  }
  0x4c   : > { %1770 = vmatmul.mubr.bf16.gmra.mrb[20].mxu1 %v3299_v9  ;;  %1421 = vmatpush1.bf16.msra.mxu0 %v3300_v11  ;;  %v3365_v11 = vld [vmem:[%s4921_s1 + $0x28c] ss:$12 sps:$4 sm:$0xff]  }
  0x4d   : > { %1777 = vmatprep.mubr.bf16.mxu1 %v3304_v15  ;;  %1503 = vmatprep.subr.bf16.mxu0 %v3303_v13  ;;  %v3363_v13 = vld [vmem:[%s4921_s1 + $0x288] ss:$12 sps:$4 sm:$0xff]  }
  0x4e   : > { %2980 = vmatpush3.bf16.msra.mxu1 %v3333_v28  ;;  %v3396_v28 = vld [vmem:[%s4921_s1 + $0x320] ss:$12 sps:$4 sm:$0xff]  }
  0x4f   : > { %1423 = vmatmul.mubr.bf16.vlgmr.msra.gmra.mrb[0].mxu0 %v3286_v60  ;;  %2981 = vmatprep.subr.bf16.mxu1 %v3343_v32  ;;  %v3347_v60 = vld [vmem:[%s4921_s1 + $0x244] ss:$12 sps:$4 sm:$0xff]  }
  0x50   : > { %1504 = vmatpush1.bf16.msra.mxu0 %v3301_v20  ;;  %1432 = vmatprep.mubr.bf16.mxu0 %v3295_v62  ;;  %v3352_v62 = vld [vmem:[%s4921_s1 + $0x25c] ss:$12 sps:$4 sm:$0xff]   ;;  %v3369_v20 = vld [vmem:[%s4921_s1 + $0x2a0] ss:$12 sps:$4 sm:$0xff]   ;;  %v3388_v32 = vld [vmem:[%s3610_s17 + $0x30] ss:$20 sps:$4 sm:$0xff]  }
  0x51   : > { %1505 = vmatprep.subr.bf16.mxu0 %v3308_v22  ;;  %v3379_v22 = vld [vmem:[%s4921_s1 + $0x2bc] ss:$12 sps:$4 sm:$0xff]  }
  0x52   : > { %2982 = vmatpush3.bf16.msra.mxu1 %v3344_v34  ;;  %v3385_v34 = vld [vmem:[%s4921_s1 + $0x2e8] ss:$12 sps:$4 sm:$0xff]  }
  0x53   : > { %2983 = vmatprep.subr.bf16.mxu1 %v3354_v40  ;;  %v3397_v40 = vld [vmem:[%s3610_s17 + $0xac] ss:$20 sps:$4 sm:$0xff]  }
  0x54   : > { %1778 = vmatmul.mubr.bf16.gmra.mrb[24].mxu1 %v3309_v25  ;;  %1506 = vmatpush1.bf16.msra.mxu0 %v3306_v23  ;;  %v3374_v23 = vld [vmem:[%s3610_s17 + $0x8] ss:$20 sps:$4 sm:$0xff]  }
  0x55   : > { %1785 = vmatprep.mubr.bf16.mxu1 %v3315_v26  ;;  %1507 = vmatprep.subr.bf16.mxu0 %v3314_v29  ;;  %v3380_v29 = vld [vmem:[%s4921_s1 + $0x2d0] ss:$12 sps:$4 sm:$0xff]  }
  0x56   : > { %2984 = vmatpush3.bf16.msra.mxu1 %v3355_v42  ;;  %v3413_v42 = vld [vmem:[%s3610_s17 + $0x38] ss:$20 sps:$4 sm:$0xff]  }
  0x57   : > { %1433 = vmatmul.mubr.bf16.gmra.mrb[4].mxu0 %v3299_v9  ;;  %2985 = vmatprep.subr.bf16.mxu1 %v3359_v46  ;;  %v3356_v9 = vld [vmem:[%s4921_s1 + $0x270] ss:$12 sps:$4 sm:$0xff]  }
  0x58   : > { %1508 = vmatpush1.bf16.msra.mxu0 %v3312_v30  ;;  %1442 = vmatprep.mubr.bf16.mxu0 %v3304_v15  ;;  %v3366_v15 = vld [vmem:[%s3610_s17 + $0x118] ss:$20 sps:$4 sm:$0xff]  }
  0x59   : > { %1509 = vmatprep.subr.bf16.mxu0 %v3319_v31  ;;  %v3387_v30 = vld [vmem:[%s4921_s1 + $0x2ec] ss:$12 sps:$4 sm:$0xff]  }
  0x5a   : > { %2986 = vmatpush3.bf16.msra.mxu1 %v3360_v47  ;;  %v3403_v31 = vld [vmem:[%s4921_s1 + $0x338] ss:$12 sps:$4 sm:$0xff]  }
  0x5b   : > { %2987 = vmatprep.subr.bf16.mxu1 %v3367_v52 }
  0x5c   : > { %1786 = vmatmul.mubr.bf16.gmra.mrb[28].mxu1 %v3320_v36  ;;  %1510 = vmatpush1.bf16.msra.mxu0 %v3317_v35  ;;  %v3389_v35 = vld [vmem:[%s3610_s17 + $0x5c] ss:$20 sps:$4 sm:$0xff]  }
  0x5d   : > { %1793 = vmatprep.mubr.bf16.mxu1 %v3326_v37  ;;  %1511 = vmatprep.subr.bf16.mxu0 %v3325_v38  ;;  %v3391_v38 = vld [vmem:[%s3610_s17 + $0x58] ss:$20 sps:$4 sm:$0xff]  }
  0x5e   : > { %2988 = vmatpush3.bf16.msra.mxu1 %v3368_v53 }
  0x5f   : > { %1443 = vmatmul.mubr.bf16.gmra.mrb[8].mxu0 %v3309_v25  ;;  %2989 = vmatprep.subr.bf16.mxu1 %v3372_v57  ;;  %v3377_v25 = vld [vmem:[%s4921_s1 + $0x2b8] ss:$12 sps:$4 sm:$0xff]  }
  0x60   : > { %1512 = vmatpush1.bf16.msra.mxu0 %v3323_v39  ;;  %1452 = vmatprep.mubr.bf16.mxu0 %v3315_v26  ;;  %v3383_v26 = vld [vmem:[%s3610_s17 + $0x34] ss:$20 sps:$4 sm:$0xff]   ;;  %v3393_v39 = vld [vmem:[%s3610_s17 + $0x84] ss:$20 sps:$4 sm:$0xff]  }
  0x61   : > { %1513 = vmatprep.subr.bf16.mxu0 %v3330_v43  ;;  %v3414_v43 = vld [vmem:[%s3610_s17 + $0x60] ss:$20 sps:$4 sm:$0xff]  }
  0x62   : > { %2990 = vmatpush3.bf16.msra.mxu1 %v3373_v58 }
  0x63   : > { %3052 = vmatprep.subr.bf16.mxu1 %v3392_v5 }
  0x64   : > { %1794 = vmatmul.mubr.bf16.gmra.mrb[32].mxu1 %v3331_v44  ;;  %1514 = vmatpush1.bf16.msra.mxu0 %v3328_v45 }
  0x65   : > { %1801 = vmatprep.mubr.bf16.mxu1 %v3337_v48  ;;  %1515 = vmatprep.subr.bf16.mxu0 %v3336_v49 }
  0x67   : > { %1453 = vmatmul.mubr.bf16.gmra.mrb[12].mxu0 %v3320_v36  ;;  %v3409_v36 = vld [vmem:[%s4921_s1 + $0x350] ss:$12 sps:$4 sm:$0xff]  }
  0x68   : > { %1516 = vmatpush1.bf16.msra.mxu0 %v3334_v51  ;;  %1462 = vmatprep.mubr.bf16.mxu0 %v3326_v37  ;;  %v3411_v37 = vld [vmem:[%s4921_s1 + $0x368] ss:$12 sps:$4 sm:$0x3f]  }
  0x69   : > { %1517 = vmatprep.subr.bf16.mxu0 %v3341_v54 }
  0x6c   : > { %1802 = vmatmul.mubr.bf16.gmra.mrb[36].mxu1 %v3342_v55  ;;  %1518 = vmatpush1.bf16.msra.mxu0 %v3339_v56 }
  0x6d   : > { %1809 = vmatprep.mubr.bf16.mxu1 %v3348_v59  ;;  %1519 = vmatprep.subr.bf16.mxu0 %v3347_v60 }
  0x6f   : > { %1463 = vmatmul.mubr.bf16.gmra.mrb[16].mxu0 %v3331_v44  ;;  %v3415_v44 = vld [vmem:[%s3610_s17 + $0x88] ss:$20 sps:$4 sm:$0xff]  }
  0x70   : > { %1520 = vmatpush1.bf16.msra.mxu0 %v3345_v61  ;;  %1472 = vmatprep.mubr.bf16.mxu0 %v3337_v48 }
  0x71   : > { %1521 = vmatprep.subr.bf16.mxu0 %v3352_v62 }
  0x74   : > { %1810 = vmatmul.mubr.bf16.gmra.mrb[40].mxu1 %v3353_v0  ;;  %1522 = vmatpush1.bf16.msra.mxu0 %v3350_v63 }
  0x75   : > { %1817 = vmatprep.mubr.bf16.mxu1 %v3361_v3  ;;  %1523 = vmatprep.subr.bf16.mxu0 %v3358_v7 }
  0x77   : > { %1473 = vmatmul.mubr.bf16.gmra.mrb[20].mxu0 %v3342_v55 }
  0x78   : > { %1524 = vmatpush1.bf16.msra.mxu0 %v3356_v9  ;;  %1482 = vmatprep.mubr.bf16.mxu0 %v3348_v59 }
  0x79   : > { %1525 = vmatprep.subr.bf16.mxu0 %v3365_v11 }
  0x7c   : > { %1818 = vmatmul.mubr.bf16.gmra.mrb[44].mxu1 %v3366_v15  ;;  %1526 = vmatpush1.bf16.msra.mxu0 %v3363_v13 }
  0x7d   : > { %1858 = vmatprep.mubr.bf16.mxu1 %v3376_v18  ;;  %1527 = vmatprep.subr.bf16.mxu0 %v3371_v19 }
  0x7f   : > { %1483 = vmatmul.mubr.bf16.gmra.mrb[24].mxu0 %v3353_v0 }
  0x80   : > { %1528 = vmatpush1.bf16.msra.mxu0 %v3369_v20  ;;  %1492 = vmatprep.mubr.bf16.mxu0 %v3361_v3 }
  0x81   : > { %1529 = vmatprep.subr.bf16.mxu0 %v3379_v22 }
  0x84   : > { %1859 = vmatmul.mubr.bf16.vlgmr.msra.gmra.mrb[48].mxu1 %v3374_v23  ;;  %1530 = vmatpush1.bf16.msra.mxu0 %v3377_v25 }
  0x85   : > { %1866 = vmatprep.mubr.bf16.mxu1 %v3383_v26  ;;  %1531 = vmatprep.subr.bf16.mxu0 %v3382_v27 }
  0x86   : > { %3053 = vmatpush3.bf16.msra.mxu1 %v3392_v5 }
  0x87   : > { %3054 = vmatprep.subr.bf16.mxu1 %v3396_v28  ;;  %1493 = vmatmul.mubr.bf16.gmra.mrb[28].mxu0 %v3366_v15 }
  0x88   : > { %1532 = vmatpush1.bf16.msra.mxu0 %v3380_v29  ;;  %1535 = vmatprep.mubr.bf16.mxu0 %v3376_v18 }
  0x89   : > { %1533 = vmatprep.subr.bf16.mxu0 %v3387_v30 }
  0x8a   : > { %3055 = vmatpush3.bf16.msra.mxu1 %v3396_v28 }
  0x8b   : > { %3056 = vmatprep.subr.bf16.mxu1 %v3403_v31 }
  0x8c   : > { %1867 = vmatmul.mubr.bf16.gmra.mrb[52].mxu1 %v3388_v32  ;;  %1534 = vmatpush1.bf16.msra.mxu0 %v3385_v34 }
  0x8d   : > { %1874 = vmatprep.mubr.bf16.mxu1 %v3389_v35  ;;  %1616 = vmatprep.subr.bf16.mxu0 %v3527_v1  ;;  %v1388_v1 = vsel %vm1380_vm0, %v3411_v37, 0 }
  0x8e   : > { %3057 = vmatpush3.bf16.msra.mxu1 %v3403_v31 }
  0x8f   : > { %3058 = vmatprep.subr.bf16.mxu1 %v3409_v36  ;;  %1536 = vmatmul.mubr.bf16.vlgmr.msra.gmra.mrb[0].mxu0 %v3374_v23 }
  0x90   : > { %1617 = vmatpush1.bf16.msra.mxu0 %v3536_v4  ;;  %1545 = vmatprep.mubr.bf16.mxu0 %v3383_v26  ;;  %v3395_v4 = vld [vmem:[%s3610_s17 + $0x80] ss:$20 sps:$4 sm:$0xff]  }
  0x91   : > { %1618 = vmatprep.subr.bf16.mxu0 %v3546_v6  ;;  %v3399_v6 = vld [vmem:[%s3610_s17 + $0xa8] ss:$20 sps:$4 sm:$0xff]  }
  0x92   : > { %3059 = vmatpush3.bf16.msra.mxu1 %v3409_v36 }
  0x93   : > { %3184 = vmatprep.subr.msk.bf16.mxu1 %vm1380_vm0, %v3411_v37 }
  0x94   : > { %1875 = vmatmul.mubr.bf16.gmra.mrb[56].mxu1 %v3391_v38  ;;  %1619 = vmatpush1.bf16.msra.mxu0 %v3554_v8  ;;  %v3400_v8 = vld [vmem:[%s3610_s17 + $0xd4] ss:$20 sps:$4 sm:$0xff]  }
  0x95   : > { %1882 = vmatprep.mubr.bf16.mxu1 %v3393_v39  ;;  %1620 = vmatprep.subr.bf16.mxu0 %v3565_v10  ;;  %v3402_v10 = vld [vmem:[%s3610_s17 + $0xd0] ss:$20 sps:$4 sm:$0xff]  }
  0x96   : > { %3061 = vmatpush3.bf16.msra.mxu1 %v1388_v1 }
  0x97   : > { %1546 = vmatmul.mubr.bf16.gmra.mrb[4].mxu0 %v3388_v32 }
  0x98   : > { %1555 = vmatprep.mubr.bf16.mxu0 %v3389_v35  ;;  %1621 = vmatpush1.bf16.msra.mxu0 %v3573_v12  ;;  %v3404_v12 = vld [vmem:[%s3610_s17 + $0xfc] ss:$20 sps:$4 sm:$0xff]  }
  0x99   : > { %1622 = vmatprep.subr.bf16.mxu0 %v3583_v14  ;;  %v3406_v14 = vld [vmem:[%s3610_s17 + $0xf8] ss:$20 sps:$4 sm:$0xff]  }
  0x9c   : > { %1883 = vmatmul.mubr.bf16.gmra.mrb[60].mxu1 %v3395_v4  ;;  %1623 = vmatpush1.bf16.msra.mxu0 %v3592_v16  ;;  %v3407_v16 = vld [vmem:[%s3610_s17 + $0x124] ss:$20 sps:$4 sm:$0xff]  }
  0x9d   : > { %1890 = vmatprep.mubr.bf16.mxu1 %v3397_v40  ;;  %2892 = vmatprep.subr.msk.bf16.mxu0 %vm1380_vm0, %v3598_v17  ;;  %v3410_v17 = vld [vmem:[%s3610_s17 + $0x120] ss:$20 sps:$4 sm:$0xff]  }
  0x9f   : > { %1556 = vmatmul.mubr.bf16.gmra.mrb[8].mxu0 %v3391_v38 }
  0xa0   : > { %1565 = vmatprep.mubr.bf16.mxu0 %v3393_v39  ;;  %1625 = vmatpush1.bf16.msra.mxu0 %v3617_v21  ;;  %v3412_v21 = vld [vmem:[%s3610_s17 + $0x10] ss:$20 sps:$4 sm:$0xff]  }
  0xa4   : > { %1891 = vmatmul.mubr.bf16.gmra.mrb[64].mxu1 %v3399_v6 }
  0xa5   : > { %1898 = vmatprep.mubr.bf16.mxu1 %v3400_v8 }
  0xa7   : > { %1566 = vmatmul.mubr.bf16.gmra.mrb[12].mxu0 %v3395_v4 }
  0xa8   : > { %1575 = vmatprep.mubr.bf16.mxu0 %v3397_v40 }
  0xac   : > { %1899 = vmatmul.mubr.bf16.gmra.mrb[68].mxu1 %v3402_v10 }
  0xad   : > { %1906 = vmatprep.mubr.bf16.mxu1 %v3404_v12 }
  0xaf   : > { %1576 = vmatmul.mubr.bf16.gmra.mrb[16].mxu0 %v3399_v6 }
  0xb0   : > { %1585 = vmatprep.mubr.bf16.mxu0 %v3400_v8 }
  0xb4   : > { %1907 = vmatmul.mubr.bf16.gmra.mrb[72].mxu1 %v3406_v14 }
  0xb5   : > { %1914 = vmatprep.mubr.bf16.mxu1 %v3407_v16 }
  0xb7   : > { %1586 = vmatmul.mubr.bf16.gmra.mrb[20].mxu0 %v3402_v10 }
  0xb8   : > { %1595 = vmatprep.mubr.bf16.mxu0 %v3404_v12 }
  0xbc   : > { %1915 = vmatmul.mubr.bf16.gmra.mrb[76].mxu1 %v3410_v17 }
  0xbd   : > { %3062 = vmatprep.mubr.msk.bf16.mxu1 %vm1355_vm1, %v3412_v21 }
  0xbf   : > { %1596 = vmatmul.mubr.bf16.gmra.mrb[24].mxu0 %v3406_v14 }
  0xc0   : > { %1605 = vmatprep.mubr.bf16.mxu0 %v3407_v16 }
  0xc4   : > { %3063 = vmatmul.mubr.msk.bf16.vlgmr.msra.gmra.mrb[80].mxu1 %vm1355_vm1, %v3413_v42 }
  0xc5   : > { %3066 = vmatprep.mubr.msk.bf16.mxu1 %vm1355_vm1, %v3414_v43 }
  0xc7   : > { %1606 = vmatmul.mubr.bf16.gmra.mrb[28].mxu0 %v3410_v17 }
  0xc8   : > { %1648 = vmatprep.mubr.bf16.mxu0 %v3472_v2 }
  0xcc   : > { %3067 = vmatmul.mubr.msk.bf16.gmra.mrb[84].mxu1 %vm1355_vm1, %v3415_v44 }
  0xcd   : > { %3070 = vmatprep.mubr.msk.bf16.mxu1 %vm1355_vm1, %v3628_v24 }
  0xcf   : > { %2893 = vmatmul.mubr.msk.bf16.vlgmr.msra.gmra.mrb[0].mxu0 %vm1355_vm1, %v3412_v21 }
  0xd0   : > { %1658 = vmatprep.mubr.bf16.mxu0 %v3472_v2 }
  0xd4   : > { %3071 = vmatmul.mubr.msk.bf16.gmra.mrb[88].mxu1 %vm1355_vm1, %v3659_v33 }
  0xd5   : > { %3074 = vmatprep.mubr.msk.bf16.mxu1 %vm1355_vm1, %v3685_v41 }
  0xd7   : > { %2894 = vmatmul.mubr.msk.bf16.gmra.mrb[4].mxu0 %vm1355_vm1, %v3413_v42 }
  0xd8   : > { %1668 = vmatprep.mubr.bf16.mxu0 %v3472_v2 }
  0xdc   : > { %3075 = vmatmul.mubr.msk.bf16.gmra.mrb[92].mxu1 %vm1355_vm1, %v3715_v50 }
  0xdf   : > { %2895 = vmatmul.mubr.msk.bf16.gmra.mrb[8].mxu0 %vm1355_vm1, %v3414_v43  ;;  %v487_v43 = vld [vmem:[%s4922_s2 + $0x8] ss:$12 sps:$4 sm:$0xff]  }
  0xe0   : > { %1678 = vmatprep.mubr.bf16.mxu0 %v3472_v2 }
  0xe7   : > { %2896 = vmatmul.mubr.msk.bf16.gmra.mrb[12].mxu0 %vm1355_vm1, %v3415_v44 }
  0xf7   : > { %v3987_v24 = vpop.f32.mrb[0].mxu1 }
  0xf8   : > { %v3989_v45 = vpop.f32.mrb[1].mxu1 }
  0xf9   : > { %v3991_v33 = vpop.f32.mrb[2].mxu1 }
  0xfa   : > { %v3993_v41 = vpop.f32.mrb[3].mxu1 }
  0xff   : > { %v3995_v46 = vpop.f32.mrb[4].mxu1 }
 0x100   : > { %v3997_v47 = vpop.f32.mrb[5].mxu1 }
 0x101   : > { %v3999_v48 = vpop.f32.mrb[6].mxu1 }
 0x102   : > { %v4001_v50 = vpop.f32.mrb[7].mxu1 }
 0x107   : > { %v4003_v49 = vpop.f32.mrb[8].mxu1 }
 0x108   : > { %v4005_v2 = vpop.f32.mrb[9].mxu1 }
 0x109   : > { %v4007_v51 = vpop.f32.mrb[10].mxu1 }
 0x10a   : > { %v4009_v52 = vpop.f32.mrb[11].mxu1 }
 0x10f   : > { %v4011_v53 = vpop.f32.mrb[12].mxu1 }
 0x110   : > { %v4013_v54 = vpop.f32.mrb[13].mxu1 }
 0x111   : > { %v4015_v55 = vpop.f32.mrb[14].mxu1 }
 0x112   : > { %v4017_v56 = vpop.f32.mrb[15].mxu1 }
 0x117   : > { %v2927_v57 = vpop.f32.mrb[16].mxu1 }
 0x118   : > { %v2928_v58 = vpop.f32.mrb[17].mxu1 }
 0x119   : > { %v2929_v59 = vadd.f32 %v2928_v58, %v2927_v57  ;;  %v2930_v60 = vpop.f32.mrb[18].mxu1  ;;  %v520_v58 = vunpack.c.l.bf16 %v487_v43 }
 0x11a   : > { %v2931_v61 = vpop.f32.mrb[19].mxu1 }
 0x11b   : > { %v2932_v62 = vadd.f32 %v2931_v61, %v2930_v60  ;;  %v523_v60 = vunpack.c.h.bf16 %v487_v43  ;;  %v499_v43 = vld [vmem:[%s4922_s2 + $0x50] ss:$12 sps:$4 sm:$0xff]  }
 0x11f   : > { %v2933_v63 = vpop.f32.mrb[20].mxu1 }
 0x120   : > { %v2934_v0 = vpop.f32.mrb[21].mxu1 }
 0x121   : > { %v2935_v3 = vadd.f32 %v2934_v0, %v2933_v63  ;;  %v2936_v5 = vpop.f32.mrb[22].mxu1  ;;  %v1764_v0 = vadd.f32 %v2929_v59, %v520_v58 }
 0x122   : > { %v2937_v7 = vpop.f32.mrb[23].mxu1 }
 0x123   : > { %v2938_v9 = vadd.f32 %v2937_v7, %v2936_v5 }
 0x127   : > { %v2939_v11 = vpop.f32.mrb[24].mxu1 }
 0x128   : > { %v2940_v13 = vpop.f32.mrb[25].mxu1 }
 0x129   : > { %v4019_v15 = vadd.f32 %v2940_v13, %v2939_v11  ;;  %v2942_v18 = vpop.f32.mrb[26].mxu1  ;;  %v491_v11 = vld [vmem:[%s4922_s2 + $0x20] ss:$12 sps:$4 sm:$0xff]  }
 0x12a   : > { %v2943_v19 = vpop.f32.mrb[27].mxu1 }
 0x12b   : > { %v4021_v20 = vadd.f32 %v2943_v19, %v2942_v18  ;;  %v1767_v18 = vadd.f32 %v2932_v62, %v523_v60 }
 0x12f   : > { %v2945_v22 = vpop.f32.mrb[28].mxu1 }
 0x130   : > { %v2946_v23 = vpop.f32.mrb[29].mxu1 }
 0x131   : > { %v4023_v25 = vadd.f32 %v2946_v23, %v2945_v22  ;;  %v2948_v26 = vpop.f32.mrb[30].mxu1  ;;  %v526_v23 = vunpack.c.l.bf16 %v491_v11 }
 0x132   : > { %v2949_v27 = vpop.f32.mrb[31].mxu1 }
 0x133   : > { %v4025_v28 = vadd.f32 %v2949_v27, %v2948_v26  ;;  %v529_v27 = vunpack.c.h.bf16 %v491_v11 }
 0x137   : > { %v2951_v29 = vpop.f32.mrb[32].mxu1 }
 0x138   : > { %v2952_v30 = vpop.f32.mrb[33].mxu1 }
 0x139   : > { %v4027_v31 = vadd.f32 %v2952_v30, %v2951_v29  ;;  %v2954_v32 = vpop.f32.mrb[34].mxu1 }
 0x13a   : > { %v2955_v34 = vpop.f32.mrb[35].mxu1 }
 0x13b   : > { %v4029_v35 = vadd.f32 %v2955_v34, %v2954_v32  ;;  %v1772_v32 = vadd.f32 %v2935_v3, %v526_v23 }
 0x13f   : > { %v2957_v36 = vpop.f32.mrb[36].mxu1 }
 0x140   : > { %v2958_v37 = vpop.f32.mrb[37].mxu1 }
 0x141   : > { %v4031_v38 = vadd.f32 %v2958_v37, %v2957_v36  ;;  %v2960_v39 = vpop.f32.mrb[38].mxu1  ;;  %v495_v36 = vld [vmem:[%s4922_s2 + $0x38] ss:$12 sps:$4 sm:$0xff]  }
 0x142   : > { %v2961_v1 = vpop.f32.mrb[39].mxu1 }
 0x143   : > { %v4033_v4 = vadd.f32 %v2961_v1, %v2960_v39  ;;  %v1775_v39 = vadd.f32 %v2938_v9, %v529_v27 }
 0x147   : > { %v2963_v40 = vpop.f32.mrb[40].mxu1 }
 0x148   : > { %v2964_v6 = vpop.f32.mrb[41].mxu1 }
 0x149   : > { %v4035_v8 = vadd.f32 %v2964_v6, %v2963_v40  ;;  %v2966_v10 = vpop.f32.mrb[42].mxu1  ;;  %v532_v40 = vunpack.c.l.bf16 %v495_v36 }
 0x14a   : > { %v2967_v12 = vpop.f32.mrb[43].mxu1 }
 0x14b   : > { %v4037_v14 = vadd.f32 %v2967_v12, %v2966_v10  ;;  %v535_v10 = vunpack.c.h.bf16 %v495_v36 }
 0x14d   : > { %v1783_v9 = vadd.f32 %v4021_v20, %v535_v10 }
 0x14f   : > { %v2969_v16 = vpop.f32.mrb[44].mxu1 }
 0x150   : > { %v2970_v17 = vpop.f32.mrb[45].mxu1 }
 0x151   : > { %v4039_v21 = vadd.f32 %v2970_v17, %v2969_v16  ;;  %v2972_v42 = vpop.f32.mrb[46].mxu1  ;;  %v1780_v17 = vadd.f32 %v4019_v15, %v532_v40 }
 0x152   : > { %v2973_v44 = vpop.f32.mrb[47].mxu1 }
 0x153   : > { %v4044_v57 = vadd.f32 %v2973_v44, %v2972_v42 }
 0x157   : > { %v2991_v61 = vpop.f32.mrb[48].mxu1 }
 0x158   : > { %v2992_v63 = vpop.f32.mrb[49].mxu1 }
 0x159   : > { %v2993_v5 = vadd.f32 %v2992_v63, %v2991_v61  ;;  %v2994_v7 = vpop.f32.mrb[50].mxu1  ;;  %v538_v61 = vunpack.c.l.bf16 %v499_v43 }
 0x15a   : > { %v2995_v13 = vpop.f32.mrb[51].mxu1 }
 0x15b   : > { %v2996_v19 = vadd.f32 %v2995_v13, %v2994_v7  ;;  %v4049_v22 = vadd.f32 %v2993_v5, %v1764_v0  ;;  %v541_v0 = vunpack.c.h.bf16 %v499_v43  ;;  %v1788_v15 = vadd.f32 %v4023_v25, %v538_v61 }
 0x15d   : > { %v4051_v26 = vadd.f32 %v2996_v19, %v1767_v18  ;;  %v503_v18 = vld [vmem:[%s4922_s2 + $0x68] ss:$12 sps:$4 sm:$0xff]   ;;  %v1791_v20 = vadd.f32 %v4025_v28, %v541_v0  ;;  %v511_v0 = vld [vmem:[%s4922_s2 + $0x98] ss:$12 sps:$4 sm:$0xff]  }
 0x15f   : > { %v2997_v29 = vpop.f32.mrb[52].mxu1 }
 0x160   : > { %v2998_v30 = vpop.f32.mrb[53].mxu1 }
 0x161   : > { %v2999_v34 = vadd.f32 %v2998_v30, %v2997_v29  ;;  %v3000_v59 = vpop.f32.mrb[54].mxu1  ;;  %v544_v29 = vunpack.c.l.bf16 %v503_v18 }
 0x162   : > { %v3001_v37 = vpop.f32.mrb[55].mxu1 }
 0x163   : > { %v3002_v1 = vadd.f32 %v3001_v37, %v3000_v59  ;;  %v4056_v62 = vadd.f32 %v2999_v34, %v1772_v32  ;;  %v547_v32 = vunpack.c.h.bf16 %v503_v18  ;;  %v1796_v25 = vadd.f32 %v4027_v31, %v544_v29 }
 0x164   : > { %v556_v29 = vunpack.c.l.bf16 %v511_v0 }
 0x165   : > { %v4058_v6 = vadd.f32 %v3002_v1, %v1775_v39  ;;  %v507_v39 = vld [vmem:[%s4922_s2 + $0x80] ss:$12 sps:$4 sm:$0xff]   ;;  %v1799_v28 = vadd.f32 %v4029_v35, %v547_v32 }
 0x166   : > { %v553_v31 = vunpack.c.h.bf16 %v507_v39 }
 0x167   : > { %v3003_v12 = vpop.f32.mrb[56].mxu1 }
 0x168   : > { %v3004_v16 = vpop.f32.mrb[57].mxu1 }
 0x169   : > { %v3005_v3 = vadd.f32 %v3004_v16, %v3003_v12  ;;  %v3006_v42 = vpop.f32.mrb[58].mxu1  ;;  %v550_v12 = vunpack.c.l.bf16 %v507_v39  ;;  %v502_v16 = vld [vmem:[%s4922_s2 + $0x60] sm:$0xff] }
 0x16a   : > { %v3007_v44 = vpop.f32.mrb[59].mxu1  ;;  %v543_v61 = vunpack.c.h.bf16 %v502_v16 }
 0x16b   : > { %v3008_v58 = vadd.f32 %v3007_v44, %v3006_v42  ;;  %v4065_v60 = vadd.f32 %v3005_v3, %v1780_v17  ;;  %v504_v42 = vld [vmem:[%s4922_s2 + $0x6c] sm:$0xff]  ;;  %v542_v44 = vunpack.c.l.bf16 %v502_v16  ;;  %v1804_v35 = vadd.f32 %v4031_v38, %v550_v12 }
 0x16c   : > { %v546_v18 = vunpack.c.h.bf16 %v504_v42 }
 0x16d   : > { %v4067_v63 = vadd.f32 %v3008_v58, %v1783_v9 }
 0x16f   : > { %v3009_v5 = vpop.f32.mrb[60].mxu1 }
 0x170   : > { %v3010_v7 = vpop.f32.mrb[61].mxu1 }
 0x171   : > { %v3011_v11 = vadd.f32 %v3010_v7, %v3009_v5  ;;  %v3012_v13 = vpop.f32.mrb[62].mxu1  ;;  %v545_v7 = vunpack.c.l.bf16 %v504_v42 }
 0x172   : > { %v3013_v19 = vpop.f32.mrb[63].mxu1 }
 0x173   : > { %v3014_v23 = vadd.f32 %v3013_v19, %v3012_v13  ;;  %v4074_v27 = vadd.f32 %v3011_v11, %v1788_v15  ;;  %v1807_v15 = vadd.f32 %v4033_v4, %v553_v31 }
 0x175   : > { %v4076_v30 = vadd.f32 %v3014_v23, %v1791_v20 }
 0x177   : > { %v3015_v34 = vpop.f32.mrb[64].mxu1 }
 0x178   : > { %v3016_v59 = vpop.f32.mrb[65].mxu1 }
 0x179   : > { %v3017_v36 = vadd.f32 %v3016_v59, %v3015_v34  ;;  %v3018_v37 = vpop.f32.mrb[66].mxu1  ;;  %v506_v34 = vld [vmem:[%s4922_s2 + $0x78] sm:$0xff] }
 0x17a   : > { %v3019_v1 = vpop.f32.mrb[67].mxu1  ;;  %v548_v31 = vunpack.c.l.bf16 %v506_v34 }
 0x17b   : > { %v3020_v40 = vadd.f32 %v3019_v1, %v3018_v37  ;;  %v4083_v10 = vadd.f32 %v3017_v36, %v1796_v25  ;;  %v559_v37 = vunpack.c.h.bf16 %v511_v0 }
 0x17d   : > { %v4088_v17 = vadd.f32 %v3020_v40, %v1799_v28  ;;  %v508_v40 = vld [vmem:[%s4922_s2 + $0x84] sm:$0xff] }
 0x17e   : > { %v552_v0 = vunpack.c.h.bf16 %v508_v40 }
 0x17f   : > { %v3021_v3 = vpop.f32.mrb[68].mxu1 }
 0x180   : > { %v3022_v43 = vpop.f32.mrb[69].mxu1 }
 0x181   : > { %v3023_v9 = vadd.f32 %v3022_v43, %v3021_v3  ;;  %v3024_v58 = vpop.f32.mrb[70].mxu1 }
 0x182   : > { %v3025_v5 = vpop.f32.mrb[71].mxu1  ;;  %v1577_v13 = vpop.f32.mrb[16].mxu0 }
 0x183   : > { %v3026_v11 = vadd.f32 %v3025_v5, %v3024_v58  ;;  %v4098_v19 = vadd.f32 %v3023_v9, %v1804_v35  ;;  %v3104_v20 = vadd.f32 %v1577_v13, %v542_v44  ;;  %v1579_v23 = vpop.f32.mrb[17].mxu0  ;;  %v515_v44 = vld [vmem:[%s4922_s2 + $0xb0] ss:$12 sps:$4 sm:$0xff]   ;;  %v551_v9 = vunpack.c.l.bf16 %v508_v40 }
 0x184   : > { %v3106_v38 = vadd.f32 %v1579_v23, %v543_v61  ;;  %v1581_v32 = vpop.f32.mrb[18].mxu0  ;;  %v1815_v58 = vadd.f32 %v4037_v14, %v559_v37  ;;  %v510_v13 = vld [vmem:[%s4922_s2 + $0x90] sm:$0xff] }
 0x185   : > { %v4103_v59 = vadd.f32 %v3026_v11, %v1807_v15  ;;  %v4106_v25 = vadd.f32 %v3104_v20, %v3987_v24  ;;  %v3108_v4 = vadd.f32 %v1581_v32, %v545_v7  ;;  %v1583_v36 = vpop.f32.mrb[19].mxu0  ;;  %v1812_v24 = vadd.f32 %v4035_v8, %v556_v29 }
 0x186   : > { %v4109_v39 = vadd.f32 %v3106_v38, %v3989_v45  ;;  %v3110_v1 = vadd.f32 %v1583_v36, %v546_v18  ;;  %v549_v45 = vunpack.c.h.bf16 %v506_v34  ;;  %v565_v29 = vunpack.c.h.bf16 %v515_v44 }
 0x187   : > { %v3027_v28 = vpop.f32.mrb[72].mxu1  ;;  %v4115_v12 = vadd.f32 %v3108_v4, %v3991_v33  ;;  %v512_v4 = vld [vmem:[%s4922_s2 + $0x9c] sm:$0xff] }
 0x188   : > { %v3028_v16 = vpop.f32.mrb[73].mxu1  ;;  %v4119_v3 = vadd.f32 %v3110_v1, %v3993_v41  ;;  %v562_v41 = vunpack.c.l.bf16 %v515_v44  ;;  %v554_v1 = vunpack.c.l.bf16 %v510_v13  ;;  %v558_v44 = vunpack.c.h.bf16 %v512_v4 }
 0x189   : > { %v3029_v42 = vadd.f32 %v3028_v16, %v3027_v28  ;;  %v3030_v43 = vpop.f32.mrb[74].mxu1 }
 0x18a   : > { %v3031_v35 = vpop.f32.mrb[75].mxu1  ;;  %v1587_v61 = vpop.f32.mrb[20].mxu0 }
 0x18b   : > { %v3032_v33 = vadd.f32 %v3031_v35, %v3030_v43  ;;  %v4125_v5 = vadd.f32 %v3029_v42, %v1812_v24  ;;  %v3112_v8 = vadd.f32 %v1587_v61, %v548_v31  ;;  %v1589_v7 = vpop.f32.mrb[21].mxu0  ;;  %v557_v24 = vunpack.c.l.bf16 %v512_v4 }
 0x18c   : > { %v3114_v15 = vadd.f32 %v1589_v7, %v549_v45  ;;  %v1591_v11 = vpop.f32.mrb[22].mxu0  ;;  %v1823_v42 = vadd.f32 %v4044_v57, %v565_v29 }
 0x18d   : > { %v4130_v18 = vadd.f32 %v3032_v33, %v1815_v58  ;;  %v4133_v20 = vadd.f32 %v3112_v8, %v3995_v46  ;;  %v3116_v14 = vadd.f32 %v1591_v11, %v551_v9  ;;  %v1593_v23 = vpop.f32.mrb[23].mxu0  ;;  %v1820_v46 = vadd.f32 %v4039_v21, %v562_v41 }
 0x18e   : > { %v4136_v38 = vadd.f32 %v3114_v15, %v3997_v47  ;;  %v3118_v32 = vadd.f32 %v1593_v23, %v552_v0  ;;  %v555_v47 = vunpack.c.h.bf16 %v510_v13  ;;  %v516_v15 = vld [vmem:[%s4922_s2 + $0xb4] sm:$0xff] }
 0x18f   : > { %v3033_v34 = vpop.f32.mrb[76].mxu1  ;;  %v4142_v36 = vadd.f32 %v3116_v14, %v3999_v48 }
 0x190   : > { %v3034_v37 = vpop.f32.mrb[77].mxu1  ;;  %v4146_v28 = vadd.f32 %v3118_v32, %v4001_v50  ;;  %v514_v50 = vld [vmem:[%s4922_s2 + $0xa8] sm:$0xff] }
 0x191   : > { %v3035_v40 = vadd.f32 %v3034_v37, %v3033_v34  ;;  %v3036_v16 = vpop.f32.mrb[78].mxu1  ;;  %v561_v32 = vunpack.c.h.bf16 %v514_v50  ;;  %v563_v37 = vunpack.c.l.bf16 %v516_v15 }
 0x192   : > { %v3037_v31 = vpop.f32.mrb[79].mxu1  ;;  %v1597_v45 = vpop.f32.mrb[24].mxu0 }
 0x193   : > { %v3038_v43 = vadd.f32 %v3037_v31, %v3036_v16  ;;  %v4149_v35 = vadd.f32 %v3035_v40, %v1820_v46  ;;  %v3120_v48 = vadd.f32 %v1597_v45, %v554_v1  ;;  %v1599_v9 = vpop.f32.mrb[25].mxu0  ;;  %v564_v1 = vunpack.c.h.bf16 %v516_v15 }
 0x194   : > { %v3122_v58 = vadd.f32 %v1599_v9, %v555_v47  ;;  %v1601_v33 = vpop.f32.mrb[26].mxu0 }
 0x195   : > { %v4154_v21 = vadd.f32 %v3038_v43, %v1823_v42  ;;  %v4157_v61 = vadd.f32 %v3120_v48, %v4003_v49  ;;  %v3124_v0 = vadd.f32 %v1601_v33, %v557_v24  ;;  %v1603_v57 = vpop.f32.mrb[27].mxu0  ;;  %v560_v49 = vunpack.c.l.bf16 %v514_v50  ;;  %v488_v43 = vld [vmem:[%s4922_s2 + $0xc] sm:$0xff] }
 0x196   : > { %v4160_v8 = vadd.f32 %v3122_v58, %v4005_v2  ;;  %v3126_v7 = vadd.f32 %v1603_v57, %v558_v44  ;;  %v521_v57 = vunpack.c.l.bf16 %v488_v43 }
 0x197   : > { %v3064_v41 = vpop.f32.mrb[80].mxu1  ;;  %v4166_v11 = vadd.f32 %v3124_v0, %v4007_v51 }
 0x198   : > { %v4169_v13 = vadd.f32 %v3064_v41, %v4056_v62  ;;  %v1957_v14 = vpop.f32.mrb[81].mxu1  ;;  %v4172_v23 = vadd.f32 %v3126_v7, %v4009_v52  ;;  %v522_v7 = vunpack.c.h.bf16 %v488_v43 }
 0x199   : > { %v4175_v2 = vadd.f32 %v1957_v14, %v4049_v22  ;;  %v3065_v29 = vpop.f32.mrb[82].mxu1  ;;  %v486_v22 = vld [vmem:[%s4922_s2] sm:$0xff] }
 0x19a   : > { %v4178_v34 = vadd.f32 %v3065_v29, %v4058_v6  ;;  %v1960_v4 = vpop.f32.mrb[83].mxu1  ;;  %v1607_v62 = vpop.f32.mrb[28].mxu0  ;;  %v519_v33 = vunpack.c.h.bf16 %v486_v22 }
 0x19b   : > { %v4181_v51 = vadd.f32 %v1960_v4, %v4051_v26  ;;  %v3128_v46 = vadd.f32 %v1607_v62, %v560_v49  ;;  %v1609_v40 = vpop.f32.mrb[29].mxu0  ;;  %v492_v4 = vld [vmem:[%s4922_s2 + $0x24] sm:$0xff] }
 0x19c   : > { %v3130_v16 = vadd.f32 %v1609_v40, %v561_v32  ;;  %v1611_v52 = vpop.f32.mrb[30].mxu0  ;;  %v528_v43 = vunpack.c.h.bf16 %v492_v4 }
 0x19d   : > { %v4187_v47 = vadd.f32 %v3128_v46, %v4011_v53  ;;  %v3132_v6 = vadd.f32 %v1611_v52, %v563_v37  ;;  %v1613_v31 = vpop.f32.mrb[31].mxu0  ;;  %v518_v53 = vunpack.c.l.bf16 %v486_v22 }
 0x19e   : > { %v4190_v24 = vadd.f32 %v3130_v16, %v4013_v54  ;;  %v3134_v26 = vadd.f32 %v1613_v31, %v564_v1 }
 0x19f   : > { %v3068_v42 = vpop.f32.mrb[84].mxu1  ;;  %v4196_v45 = vadd.f32 %v3132_v6, %v4015_v55 }
 0x1a0   : > { %v4199_v44 = vadd.f32 %v3068_v42, %v4074_v27  ;;  %v1973_v48 = vpop.f32.mrb[85].mxu1  ;;  %v4202_v9 = vadd.f32 %v3134_v26, %v4017_v56  ;;  %v527_v26 = vunpack.c.l.bf16 %v492_v4 }
 0x1a1   : > { %v4205_v54 = vadd.f32 %v1973_v48, %v4065_v60  ;;  %v3069_v58 = vpop.f32.mrb[86].mxu1  ;;  %v490_v60 = vld [vmem:[%s4922_s2 + $0x18] sm:$0xff] }
 0x1a2   : > { %v4208_v50 = vadd.f32 %v3069_v58, %v4076_v30  ;;  %v1976_v0 = vpop.f32.mrb[87].mxu1  ;;  %v1650_v27 = vpop.f32.mrb[0].mxu0  ;;  %v524_v1 = vunpack.c.l.bf16 %v490_v60  ;;  %v525_v22 = vunpack.c.h.bf16 %v490_v60 }
 0x1a3   : > { %v4211_v55 = vadd.f32 %v1976_v0, %v4067_v63  ;;  %v4213_v41 = vadd.f32 %v1650_v27, %v518_v53  ;;  %v1652_v15 = vpop.f32.mrb[1].mxu0 }
 0x1a4   : > { %v4215_v56 = vadd.f32 %v1652_v15, %v519_v33  ;;  %v1654_v14 = vpop.f32.mrb[2].mxu0  ;;  %v2052_v15 = vadd.f32 %v4109_v39, %v4106_v25 }
 0x1a5   : > { %v4220_v49 = vadd.f32 %v1654_v14, %v521_v57  ;;  %v1656_v30 = vpop.f32.mrb[3].mxu0  ;;  %v496_v14 = vld [vmem:[%s4922_s2 + $0x3c] sm:$0xff] }
 0x1a6   : > { %v4222_v29 = vadd.f32 %v1656_v30, %v522_v7  ;;  %v2020_v63 = vadd.f32 %v4215_v56, %v4213_v41 }
 0x1a7   : > { %v3072_v32 = vpop.f32.mrb[88].mxu1 }
 0x1a8   : > { %v4230_v37 = vadd.f32 %v3072_v32, %v4098_v19  ;;  %v1989_v62 = vpop.f32.mrb[89].mxu1  ;;  %v2024_v46 = vadd.f32 %v4222_v29, %v4220_v49  ;;  %v2021_v52 = vadd.f32 %v2020_v63, %v4175_v2 }
 0x1a9   : > { %v4235_v40 = vadd.f32 %v1989_v62, %v4083_v10  ;;  %v3073_v16 = vpop.f32.mrb[90].mxu1 }
 0x1aa   : > { %v4239_v6 = vadd.f32 %v3073_v16, %v4103_v59  ;;  %v1992_v31 = vpop.f32.mrb[91].mxu1  ;;  %v1660_v42 = vpop.f32.mrb[4].mxu0  ;;  %2022 = vadd.xlane.f32.xlu0 %v2021_v52  ;;  %v2025_v33 = vadd.f32 %v2024_v46, %v4181_v51  ;;  %v494_v59 = vld [vmem:[%s4922_s2 + $0x30] sm:$0xff] }
 0x1ab   : > { %v4242_v19 = vadd.f32 %v1992_v31, %v4088_v17  ;;  %v4244_v48 = vadd.f32 %v1660_v42, %v524_v1  ;;  %v1662_v53 = vpop.f32.mrb[5].mxu0  ;;  %v530_v32 = vunpack.c.l.bf16 %v494_v59  ;;  %v531_v63 = vunpack.c.h.bf16 %v494_v59 }
 0x1ac   : > { %v4246_v10 = vadd.f32 %v1662_v53, %v525_v22  ;;  %v1664_v58 = vpop.f32.mrb[6].mxu0  ;;  %v2053_v16 = vadd.f32 %v2052_v15, %v4235_v40  ;;  %v534_v42 = vunpack.c.h.bf16 %v496_v14 }
 0x1ad   : > { %v4252_v0 = vadd.f32 %v1664_v58, %v527_v26  ;;  %v1666_v57 = vpop.f32.mrb[7].mxu0 }
 0x1ae   : > { %v4254_v17 = vadd.f32 %v1666_v57, %v528_v43  ;;  %2026 = vadd.xlane.f32.xlu0 %v2025_v33  ;;  %v2028_v7 = vadd.f32 %v4246_v10, %v4244_v48 }
 0x1af   : > { %v3076_v27 = vpop.f32.mrb[92].mxu1 }
 0x1b0   : > { %v4264_v60 = vadd.f32 %v3076_v27, %v4149_v35  ;;  %v2005_v30 = vpop.f32.mrb[93].mxu1  ;;  %v2032_v4 = vadd.f32 %v4254_v17, %v4252_v0  ;;  %v2029_v46 = vadd.f32 %v2028_v7, %v4169_v13  ;;  %v533_v35 = vunpack.c.l.bf16 %v496_v14  ;;  %v500_v7 = vld [vmem:[%s4922_s2 + $0x54] sm:$0xff] }
 0x1b1   : > { %v4269_v62 = vadd.f32 %v2005_v30, %v4125_v5  ;;  %v3077_v1 = vpop.f32.mrb[94].mxu1 }
 0x1b2   : > { %v4274_v52 = vadd.f32 %v3077_v1, %v4154_v21  ;;  %v2008_v22 = vpop.f32.mrb[95].mxu1  ;;  %v1670_v26 = vpop.f32.mrb[8].mxu0  ;;  %2030 = vadd.xlane.f32.xlu1 %v2029_v46  ;;  %2054 = vadd.xlane.f32.xlu0 %v2053_v16  ;;  %v2033_v33 = vadd.f32 %v2032_v4, %v4178_v34  ;;  %v498_v21 = vld [vmem:[%s4922_s2 + $0x48] sm:$0xff]  ;;  %v540_v46 = vunpack.c.h.bf16 %v500_v7 }
 0x1b3   : > { %v4277_v31 = vadd.f32 %v2008_v22, %v4130_v18  ;;  %v4279_v43 = vadd.f32 %v1670_v26, %v530_v32  ;;  %v1672_v5 = vpop.f32.mrb[9].mxu0  ;;  %v536_v15 = vunpack.c.l.bf16 %v498_v21  ;;  %v537_v32 = vunpack.c.h.bf16 %v498_v21 }
 0x1b4   : > { %v4281_v53 = vadd.f32 %v1672_v5, %v531_v63  ;;  %v1674_v58 = vpop.f32.mrb[10].mxu0  ;;  %v539_v63 = vunpack.c.l.bf16 %v500_v7  ;;  %v2060_v7 = vadd.f32 %v4136_v38, %v4133_v20 }
 0x1b5   : > { %v4287_v59 = vadd.f32 %v1674_v58, %v533_v35  ;;  %v1676_v18 = vpop.f32.mrb[11].mxu0 }
 0x1b6   : > { %v2036_v57 = vadd.f32 %v4281_v53, %v4279_v43  ;;  %v4291_v27 = vadd.f32 %v1676_v18, %v534_v42  ;;  %2034 = vadd.xlane.f32.xlu1 %v2033_v33 }
 0x1b8   : > { %v2040_v14 = vadd.f32 %v4291_v27, %v4287_v59  ;;  %v2037_v30 = vadd.f32 %v2036_v57, %v4205_v54 }
 0x1ba   : > { %v1680_v4 = vpop.f32.mrb[12].mxu0  ;;  %2038 = vadd.xlane.f32.xlu0 %v2037_v30  ;;  %v2041_v1 = vadd.f32 %v2040_v14, %v4211_v55  ;;  %v2056_v14 = vadd.f32 %v4119_v3, %v4115_v12 }
 0x1bb   : > { %v4300_v16 = vadd.f32 %v1680_v4, %v536_v15  ;;  %v1682_v22 = vpop.f32.mrb[13].mxu0  ;;  %v2061_v15 = vadd.f32 %v2060_v7, %v4230_v37  ;;  %v2064_v4 = vadd.f32 %v4146_v28, %v4142_v36 }
 0x1bc   : > { %v4302_v35 = vadd.f32 %v1682_v22, %v537_v32  ;;  %v1684_v26 = vpop.f32.mrb[14].mxu0  ;;  %2042 = vadd.xlane.f32.xlu1 %v2041_v1  ;;  %v2057_v30 = vadd.f32 %v2056_v14, %v4242_v19  ;;  %v2068_v32 = vadd.f32 %v4160_v8, %v4157_v61 }
 0x1bd   : > { %v4304_v42 = vadd.f32 %v1684_v26, %v539_v63  ;;  %v1686_v5 = vpop.f32.mrb[15].mxu0  ;;  %v2065_v1 = vadd.f32 %v2064_v4, %v4239_v6  ;;  %v2072_v26 = vadd.f32 %v4172_v23, %v4166_v11 }
 0x1be   : > { %v2044_v58 = vadd.f32 %v4302_v35, %v4300_v16  ;;  %v4308_v33 = vadd.f32 %v1686_v5, %v540_v46  ;;  %v2069_v63 = vadd.f32 %v2068_v32, %v4269_v62  ;;  %v2076_v46 = vadd.f32 %v4190_v24, %v4187_v47 }
 0x1bf   : > { %v2073_v5 = vadd.f32 %v2072_v26, %v4277_v31 }
 0x1c0   : > { %v2048_v21 = vadd.f32 %v4308_v33, %v4304_v42  ;;  %v2045_v18 = vadd.f32 %v2044_v58, %v4199_v44  ;;  %v2077_v22 = vadd.f32 %v2076_v46, %v4264_v60  ;;  %v2080_v58 = vadd.f32 %v4202_v9, %v4196_v45 }
 0x1c2   : > { %2046 = vadd.xlane.f32.xlu0 %v2045_v18  ;;  %v2049_v57 = vadd.f32 %v2048_v21, %v4208_v50  ;;  %v2081_v21 = vadd.f32 %v2080_v58, %v4274_v52 }
 0x1c4   : > { %2050 = vadd.xlane.f32.xlu1 %v2049_v57 }
 0x1c6   : > { %2062 = vadd.xlane.f32.xlu0 %v2061_v15 }
 0x1c8   : > { %2058 = vadd.xlane.f32.xlu1 %v2057_v30 }
 0x1ca   : > { %2070 = vadd.xlane.f32.xlu0 %v2069_v63 }
 0x1cc   : > { %2066 = vadd.xlane.f32.xlu1 %v2065_v1 }
 0x1ce   : > { %2078 = vadd.xlane.f32.xlu0 %v2077_v22 }
 0x1d0   : > { %2074 = vadd.xlane.f32.xlu1 %v2073_v5 }
 0x1d4   : > { %2082 = vadd.xlane.f32.xlu1 %v2081_v21 }
 0x237   : > { %v2023_v18 = vpop.xlane.xlu0 %2022 }
 0x238   : > { %v2085_v57 = vmul.f32 0.0026041667, %v2023_v18 }
 0x23a   : > { %v4336_v7 = vsub.f32 %v4213_v41, %v2085_v57  ;;  %v4339_v15 = vsub.f32 %v4215_v56, %v2085_v57  ;;  %v4342_v14 = vsub.f32 %v4175_v2, %v2085_v57 }
 0x23b   : > { %v2027_v30 = vpop.xlane.xlu0 %2026 }
 0x23c   : > { %v2086_v32 = vmul.f32 0.0026041667, %v2027_v30  ;;  %v2149_v63 = vmul.f32 %v4336_v7, %v4336_v7  ;;  %v2150_v4 = vmul.f32 %v4339_v15, %v4339_v15  ;;  %v2151_v56 = vmul.f32 %v4342_v14, %v4342_v14 }
 0x23e   : > { %v4349_v1 = vsub.f32 %v4220_v49, %v2086_v32  ;;  %v4352_v41 = vsub.f32 %v4222_v29, %v2086_v32  ;;  %v2197_v46 = vadd.f32 %v2150_v4, %v2149_v63  ;;  %v4357_v2 = vsub.f32 %v4181_v51, %v2086_v32 }
 0x23f   : > { %v2031_v49 = vpop.xlane.xlu1 %2030  ;;  %v2055_v18 = vpop.xlane.xlu0 %2054 }
 0x240   : > { %4940 = vst [vmem:[#allocation2_spill] sm:$0xff] %v4349_v1  ;;  %4941 = vst [vmem:[#allocation3_spill] sm:$0xff] %v4357_v2  ;;  %v2198_v22 = vadd.f32 %v2197_v46, %v2151_v56  ;;  %v2152_v26 = vmul.f32 %v4349_v1, %v4349_v1  ;;  %v2153_v5 = vmul.f32 %v4352_v41, %v4352_v41  ;;  %v2087_v30 = vmul.f32 0.0026041667, %v2031_v49 }
 0x241   : > { %v2154_v29 = vmul.f32 %v4357_v2, %v4357_v2  ;;  %v2093_v32 = vmul.f32 0.0026041667, %v2055_v18 }
 0x242   : > { %2199 = vadd.xlane.f32.xlu0 %v2198_v22  ;;  %v2201_v58 = vadd.f32 %v2153_v5, %v2152_v26  ;;  %v4368_v4 = vsub.f32 %v4244_v48, %v2087_v30  ;;  %v4371_v56 = vsub.f32 %v4246_v10, %v2087_v30  ;;  %v4388_v10 = vsub.f32 %v4169_v13, %v2087_v30 }
 0x243   : > { %v2035_v57 = vpop.xlane.xlu1 %2034  ;;  %v4376_v22 = vsub.f32 %v4106_v25, %v2093_v32  ;;  %v4379_v26 = vsub.f32 %v4109_v39, %v2093_v32 }
 0x244   : > { %v2202_v21 = vadd.f32 %v2201_v58, %v2154_v29  ;;  %4942 = vst [vmem:[#allocation4_spill] sm:$0xff] %v4368_v4  ;;  %4943 = vst [vmem:[#allocation5_spill] sm:$0xff] %v4371_v56  ;;  %v2088_v49 = vmul.f32 0.0026041667, %v2035_v57  ;;  %v2155_v58 = vmul.f32 %v4368_v4, %v4368_v4  ;;  %v2156_v48 = vmul.f32 %v4371_v56, %v4371_v56 }
 0x245   : > { %4944 = vst [vmem:[#allocation6_spill] sm:$0xff] %v4376_v22  ;;  %4945 = vst [vmem:[#allocation7_spill] sm:$0xff] %v4379_v26  ;;  %v2173_v39 = vmul.f32 %v4376_v22, %v4376_v22  ;;  %v2174_v57 = vmul.f32 %v4379_v26, %v4379_v26 }
 0x246   : > { %2203 = vadd.xlane.f32.xlu1 %v2202_v21  ;;  %4946 = vst [vmem:[#allocation8_spill] sm:$0xff] %v4388_v10  ;;  %v4391_v21 = vsub.f32 %v4235_v40, %v2093_v32  ;;  %v4404_v13 = vsub.f32 %v4252_v0, %v2088_v49  ;;  %v2205_v32 = vadd.f32 %v2156_v48, %v2155_v58 }
 0x247   : > { %v2039_v51 = vpop.xlane.xlu0 %2038  ;;  %v2229_v58 = vadd.f32 %v2174_v57, %v2173_v39 }
 0x248   : > { %4947 = vst [vmem:[#allocation9_spill] sm:$0xff] %v4391_v21  ;;  %4950 = vst [vmem:[#allocation12_spill] sm:$0xff] %v4404_v13  ;;  %v2175_v22 = vmul.f32 %v4391_v21, %v4391_v21  ;;  %v2089_v48 = vmul.f32 0.0026041667, %v2039_v51 }
 0x249   : > { %v4365_v63 = vpop.xlane.xlu1 %2042 }
 0x24f   : > { %v4373_v46 = vpop.xlane.xlu0 %2046 }
 0x251   : > { %v4381_v5 = vpop.xlane.xlu1 %2050 }
 0x253   : > { %v2063_v29 = vpop.xlane.xlu0 %2062 }
 0x254   : > { %v2095_v25 = vmul.f32 0.0026041667, %v2063_v29  ;;  %v4410_v29 = vsub.f32 %v4254_v17, %v2088_v49 }
 0x255   : > { %v2059_v18 = vpop.xlane.xlu1 %2058 }
 0x256   : > { %v4398_v2 = vsub.f32 %v4133_v20, %v2095_v25  ;;  %v4401_v4 = vsub.f32 %v4136_v38, %v2095_v25  ;;  %v2094_v56 = vmul.f32 0.0026041667, %v2059_v18  ;;  %v4407_v40 = vsub.f32 %v4230_v37, %v2095_v25 }
 0x257   : > { %v2071_v30 = vpop.xlane.xlu0 %2070  ;;  %v2157_v20 = vmul.f32 %v4388_v10, %v4388_v10  ;;  %v4417_v38 = vsub.f32 %v4178_v34, %v2088_v49 }
 0x258   : > { %4948 = vst [vmem:[#allocation10_spill] sm:$0xff] %v4398_v2  ;;  %4949 = vst [vmem:[#allocation11_spill] sm:$0xff] %v4401_v4  ;;  %v2179_v0 = vmul.f32 %v4398_v2, %v4398_v2  ;;  %v2180_v37 = vmul.f32 %v4401_v4, %v4401_v4  ;;  %v4424_v17 = vsub.f32 %v4115_v12, %v2094_v56  ;;  %v2097_v1 = vmul.f32 0.0026041667, %v2071_v30 }
 0x259   : > { %4951 = vst [vmem:[#allocation13_spill] sm:$0xff] %v4417_v38  ;;  %v2067_v18 = vpop.xlane.xlu1 %2066  ;;  %v4427_v25 = vsub.f32 %v4119_v3, %v2094_v56  ;;  %v2181_v34 = vmul.f32 %v4407_v40, %v4407_v40  ;;  %v2206_v26 = vadd.f32 %v2205_v32, %v2157_v20  ;;  %v2158_v2 = vmul.f32 %v4404_v13, %v4404_v13 }
 0x25a   : > { %v2096_v21 = vmul.f32 0.0026041667, %v2067_v18  ;;  %v2237_v49 = vadd.f32 %v2180_v37, %v2179_v0  ;;  %v2230_v4 = vadd.f32 %v2229_v58, %v2175_v22  ;;  %v2159_v32 = vmul.f32 %v4410_v29, %v4410_v29 }
 0x25b   : > { %v2079_v10 = vpop.xlane.xlu0 %2078  ;;  %v4470_v0 = vsub.f32 %v4157_v61, %v2097_v1 }
 0x25c   : > { %v4434_v39 = vsub.f32 %v4142_v36, %v2096_v21  ;;  %v4437_v12 = vsub.f32 %v4146_v28, %v2096_v21  ;;  %v2099_v51 = vmul.f32 0.0026041667, %v2079_v10  ;;  %v4440_v3 = vsub.f32 %v4239_v6, %v2096_v21 }
 0x25d   : > { %v2075_v57 = vpop.xlane.xlu1 %2074  ;;  %v2238_v18 = vadd.f32 %v2237_v49, %v2181_v34  ;;  %v2176_v36 = vmul.f32 %v4424_v17, %v4424_v17  ;;  %v2177_v28 = vmul.f32 %v4427_v25, %v4427_v25  ;;  %v4455_v6 = vsub.f32 %v4279_v43, %v2089_v48 }
 0x25e   : > { %4952 = vst [vmem:[#allocation14_spill] sm:$0xff] %v4440_v3  ;;  %v4445_v20 = vsub.f32 %v4187_v47, %v2099_v51  ;;  %v4448_v30 = vsub.f32 %v4190_v24, %v2099_v51  ;;  %v2182_v22 = vmul.f32 %v4434_v39, %v4434_v39  ;;  %v2183_v47 = vmul.f32 %v4437_v12, %v4437_v12 }
 0x25f   : > { %2239 = vadd.xlane.f32.xlu0 %v2238_v18  ;;  %v2160_v24 = vmul.f32 %v4417_v38, %v4417_v38  ;;  %v4464_v10 = vsub.f32 %v4281_v53, %v2089_v48  ;;  %v4467_v21 = vsub.f32 %v4242_v19, %v2094_v56  ;;  %v4473_v43 = vsub.f32 %v4160_v8, %v2097_v1 }
 0x260   : > { %4953 = vst [vmem:[#allocation15_spill] sm:$0xff] %v4445_v20  ;;  %v2184_v58 = vmul.f32 %v4440_v3, %v4440_v3  ;;  %v2241_v34 = vadd.f32 %v2183_v47, %v2182_v22  ;;  %v2191_v49 = vmul.f32 %v4445_v20, %v4445_v20  ;;  %v2192_v53 = vmul.f32 %v4448_v30, %v4448_v30 }
 0x261   : > { %v2083_v37 = vpop.xlane.xlu1 %2082  ;;  %v4482_v19 = vsub.f32 %v4205_v54, %v2089_v48  ;;  %v2098_v56 = vmul.f32 0.0026041667, %v2075_v57  ;;  %v2233_v18 = vadd.f32 %v2177_v28, %v2176_v36  ;;  %v2090_v8 = vmul.f32 0.0026041667, %v4365_v63 }
 0x262   : > { %v2100_v61 = vmul.f32 0.0026041667, %v2083_v37  ;;  %v4486_v38 = vsub.f32 %v4264_v60, %v2099_v51  ;;  %v2242_v3 = vadd.f32 %v2241_v34, %v2184_v58  ;;  %v2209_v22 = vadd.f32 %v2159_v32, %v2158_v2 }
 0x263   : > { %2231 = vadd.xlane.f32.xlu0 %v2230_v4  ;;  %v2091_v47 = vmul.f32 0.0026041667, %v4373_v46  ;;  %v2178_v54 = vmul.f32 %v4467_v21, %v4467_v21  ;;  %v2253_v48 = vadd.f32 %v2192_v53, %v2191_v49  ;;  %v2185_v60 = vmul.f32 %v4470_v0, %v4470_v0 }
 0x264   : > { %v4490_v20 = vsub.f32 %v4196_v45, %v2100_v61  ;;  %v4493_v13 = vsub.f32 %v4202_v9, %v2100_v61  ;;  %2243 = vadd.xlane.f32.xlu1 %v2242_v3  ;;  %v2186_v63 = vmul.f32 %v4473_v43, %v4473_v43  ;;  %v2359_v2 = vlaneseq }
 0x265   : > { %v4502_v4 = vsub.f32 %v4269_v62, %v2097_v1  ;;  %v4505_v45 = vsub.f32 %v4166_v11, %v2098_v56  ;;  %v4508_v9 = vsub.f32 %v4172_v23, %v2098_v56  ;;  %v2234_v46 = vadd.f32 %v2233_v18, %v2178_v54 }
 0x266   : > { %v2193_v51 = vmul.f32 %v4486_v38, %v4486_v38  ;;  %v2194_v3 = vmul.f32 %v4490_v20, %v4490_v20  ;;  %v2195_v57 = vmul.f32 %v4493_v13, %v4493_v13  ;;  %v4516_v32 = vshrl.u32 %v2359_v2, 7 }
 0x267   : > { %2207 = vadd.xlane.f32.xlu0 %v2206_v26  ;;  %v4519_v62 = vsub.f32 %v4300_v16, %v2091_v47  ;;  %v4522_v11 = vsub.f32 %v4302_v35, %v2091_v47  ;;  %v2161_v23 = vmul.f32 %v4455_v6, %v4455_v6  ;;  %v2162_v1 = vmul.f32 %v4464_v10, %v4464_v10  ;;  %v4534_v16 = vld [vmem:[%s4923_s3] sm:$0x7] }
 0x268   : > { %v4529_v26 = vsub.f32 %v4274_v52, %v2100_v61  ;;  %2235 = vadd.xlane.f32.xlu1 %v2234_v46  ;;  %v2254_v36 = vadd.f32 %v2253_v48, %v2193_v51  ;;  %v2245_v28 = vadd.f32 %v2186_v63, %v2185_v60  ;;  %v4539_v35 = vld [vmem:[%s4924_s4] sm:$0x7]  ;;  %v2369_v37 = vsub.s32 2, %v4516_v32 }
 0x269   : > { %v4543_v58 = vsub.f32 %v4287_v59, %v2090_v8  ;;  %v4546_v52 = vsub.f32 %v4291_v27, %v2090_v8  ;;  %v2092_v34 = vmul.f32 0.0026041667, %v4381_v5  ;;  %v2210_v49 = vadd.f32 %v2209_v22, %v2160_v24 }
 0x26a   : > { %v2187_v53 = vmul.f32 %v4502_v4, %v4502_v4  ;;  %v2257_v61 = vadd.f32 %v2195_v57, %v2194_v3  ;;  %v2188_v18 = vmul.f32 %v4505_v45, %v4505_v45  ;;  %v2189_v54 = vmul.f32 %v4508_v9, %v4508_v9 }
 0x26b   : > { %2255 = vadd.xlane.f32.xlu0 %v2254_v36  ;;  %v2213_v48 = vadd.f32 %v2162_v1, %v2161_v23  ;;  %v2167_v59 = vmul.f32 %v4519_v62, %v4519_v62  ;;  %v4558_v27 = vrot.slane %v4534_v16, %v2369_v37  ;;  %v4561_v5 = vrot.slane %v4539_v35, %v2369_v37 }
 0x26c   : > { %v4564_v24 = vsub.f32 %v4277_v31, %v2098_v56  ;;  %2211 = vadd.xlane.f32.xlu1 %v2210_v49  ;;  %v2246_v22 = vadd.f32 %v2245_v28, %v2187_v53  ;;  %v2196_v60 = vmul.f32 %v4529_v26, %v4529_v26  ;;  %v2168_v63 = vmul.f32 %v4522_v11, %v4522_v11 }
 0x26d   : > { %v4571_v2 = vsub.f32 %v4199_v44, %v2091_v47  ;;  %v2163_v46 = vmul.f32 %v4482_v19, %v4482_v19  ;;  %v2164_v51 = vmul.f32 %v4543_v58, %v4543_v58  ;;  %v2165_v31 = vmul.f32 %v4546_v52, %v4546_v52 }
 0x26e   : > { %v4580_v56 = vsub.f32 %v4304_v42, %v2092_v34  ;;  %v4583_v3 = vsub.f32 %v4308_v33, %v2092_v34  ;;  %v2258_v57 = vadd.f32 %v2257_v61, %v2196_v60  ;;  %v2249_v23 = vadd.f32 %v2189_v54, %v2188_v18 }
 0x26f   : > { %2247 = vadd.xlane.f32.xlu0 %v2246_v22  ;;  %v4586_v44 = vsub.f32 %v4211_v55, %v2090_v8  ;;  %v2214_v47 = vadd.f32 %v2213_v48, %v2163_v46  ;;  %v2190_v1 = vmul.f32 %v4564_v24, %v4564_v24  ;;  %v2221_v36 = vadd.f32 %v2168_v63, %v2167_v59 }
 0x270   : > { %2259 = vadd.xlane.f32.xlu1 %v2258_v57  ;;  %v2217_v28 = vadd.f32 %v2165_v31, %v2164_v51  ;;  %v2169_v42 = vmul.f32 %v4571_v2, %v4571_v2  ;;  %v2170_v33 = vmul.f32 %v4580_v56, %v4580_v56  ;;  %v2171_v49 = vmul.f32 %v4583_v3, %v4583_v3 }
 0x271   : > { %v2250_v37 = vadd.f32 %v2249_v23, %v2190_v1  ;;  %v4597_v55 = vsub.f32 %v4208_v50, %v2092_v34  ;;  %v2166_v53 = vmul.f32 %v4586_v44, %v4586_v44  ;;  %v2365_v46 = vsub.s32 1, %v4516_v32 }
 0x272   : > { %v2222_v8 = vadd.f32 %v2221_v36, %v2169_v42  ;;  %v2225_v18 = vadd.f32 %v2171_v49, %v2170_v33  ;;  %v2361_v51 = vsub.s32 0, %v4516_v32 }
 0x273   : > { %2215 = vadd.xlane.f32.xlu0 %v2214_v47  ;;  %v2218_v61 = vadd.f32 %v2217_v28, %v2166_v53  ;;  %v2172_v54 = vmul.f32 %v4597_v55, %v4597_v55  ;;  %v4606_v31 = vrot.slane %v4534_v16, %v2365_v46  ;;  %v4612_v47 = vrot.slane %v4539_v35, %v2365_v46 }
 0x274   : > { %2251 = vadd.xlane.f32.xlu1 %v2250_v37  ;;  %v4609_v57 = vrot.slane %v4534_v16, %v2361_v51  ;;  %v4617_v28 = vrot.slane %v4539_v35, %v2361_v51  ;;  %v4954_v35 = vld [vmem:[#allocation2_spill] sm:$0xff] }
 0x275   : > { %v2226_v48 = vadd.f32 %v2225_v18, %v2172_v54 }
 0x277   : > { %2223 = vadd.xlane.f32.xlu0 %v2222_v8 }
 0x278   : > { %2219 = vadd.xlane.f32.xlu1 %v2218_v61  ;;  %v4955_v61 = vld [vmem:[#allocation3_spill] sm:$0xff] }
 0x27c   : > { %2227 = vadd.xlane.f32.xlu1 %v2226_v48 }
 0x2cf   : > { %v2200_v59 = vpop.xlane.xlu0 %2199 }
 0x2d0   : > { %v2261_v22 = vmul.f32 0.0026041667, %v2200_v59 }
 0x2d2   : > { %v2277_v60 = vadd.f32 1e-06, %v2261_v22 }
 0x2d3   : > { %v2204_v50 = vpop.xlane.xlu1 %2203 }
 0x2d4   : > { %3416 = vrsqrt.f32 %v2277_v60  ;;  %v2262_v34 = vmul.f32 0.0026041667, %v2204_v50 }
 0x2d6   : > { %v2278_v63 = vadd.f32 1e-06, %v2262_v34 }
 0x2d8   : > { %3418 = vrsqrt.f32 %v2278_v63 }
 0x2de   : > { %v3417_v23 = vpop.eup %3416 }
 0x2df   : > { %v2310_v1 = vmul.f32 %v3417_v23, %v4339_v15  ;;  %v2309_v36 = vmul.f32 %v3417_v23, %v4336_v7  ;;  %v2311_v37 = vmul.f32 %v3417_v23, %v4342_v14 }
 0x2e1   : > { %v2375_v32 = vmul.f32 %v4606_v31, %v2310_v1  ;;  %v2374_v42 = vmul.f32 %v4609_v57, %v2309_v36  ;;  %v2376_v16 = vmul.f32 %v4558_v27, %v2311_v37 }
 0x2e2   : > { %v3419_v33 = vpop.eup %3418 }
 0x2e3   : > { %v2440_v49 = vadd.f32 %v4612_v47, %v2375_v32  ;;  %v2439_v8 = vadd.f32 %v4617_v28, %v2374_v42  ;;  %v4626_v15 = vadd.f32 %v4561_v5, %v2376_v16  ;;  %v2313_v7 = vmul.f32 %v3419_v33, %v4352_v41 }
 0x2e4   : > { %v2312_v53 = vmul.f32 %v3419_v33, %v4954_v35  ;;  %v2314_v14 = vmul.f32 %v3419_v33, %v4955_v61 }
 0x2e5   : > { %2519 = vxpose.xlu1.b32.start [1/16] %v2440_v49, 128  ;;  %2487 = vxpose.xlu0.b32.start [1/16] %v2439_v8, 128  ;;  %v2378_v18 = vmul.f32 %v4606_v31, %v2313_v7 }
 0x2e6   : > { %v2377_v54 = vmul.f32 %v4609_v57, %v2312_v53  ;;  %v2379_v48 = vmul.f32 %v4558_v27, %v2314_v14 }
 0x2e7   : > { %v2443_v59 = vadd.f32 %v4612_v47, %v2378_v18 }
 0x2e8   : > { %v2442_v22 = vadd.f32 %v4617_v28, %v2377_v54  ;;  %v4637_v60 = vadd.f32 %v4561_v5, %v2379_v48  ;;  %v4957_v54 = vld [vmem:[#allocation11_spill] sm:$0xff] }
 0x2e9   : > { %2520 = vxpose.xlu1.b32.cont [2/16] %v2443_v59, 128  ;;  %v4958_v59 = vld [vmem:[#allocation10_spill] sm:$0xff] }
 0x2ea   : > { %4956 = vst [vmem:[#allocation2_spill] sm:$0xff] %v4637_v60  ;;  %2488 = vxpose.xlu0.b32.cont [2/16] %v2442_v22, 128 }
 0x2ec   : > { %v2240_v41 = vpop.xlane.xlu0 %2239 }
 0x2ed   : > { %v2271_v50 = vmul.f32 0.0026041667, %v2240_v41 }
 0x2ef   : > { %v2287_v34 = vadd.f32 1e-06, %v2271_v50 }
 0x2f0   : > { %v2232_v63 = vpop.xlane.xlu0 %2231 }
 0x2f1   : > { %3420 = vrsqrt.f32 %v2287_v34  ;;  %v2269_v46 = vmul.f32 0.0026041667, %v2232_v63  ;;  %v2244_v51 = vpop.xlane.xlu1 %2243 }
 0x2f2   : > { %v2272_v1 = vmul.f32 0.0026041667, %v2244_v51 }
 0x2f3   : > { %v2285_v23 = vadd.f32 1e-06, %v2269_v46 }
 0x2f4   : > { %v2208_v36 = vpop.xlane.xlu0 %2207  ;;  %v2288_v37 = vadd.f32 1e-06, %v2272_v1 }
 0x2f5   : > { %3422 = vrsqrt.f32 %v2285_v23  ;;  %v2263_v32 = vmul.f32 0.0026041667, %v2208_v36  ;;  %v2236_v42 = vpop.xlane.xlu1 %2235 }
 0x2f6   : > { %3424 = vrsqrt.f32 %v2288_v37  ;;  %v2270_v33 = vmul.f32 0.0026041667, %v2236_v42  ;;  %v4959_v42 = vld [vmem:[#allocation7_spill] sm:$0xff] }
 0x2f7   : > { %v2279_v16 = vadd.f32 1e-06, %v2263_v32 }
 0x2f8   : > { %v2256_v49 = vpop.xlane.xlu0 %2255  ;;  %v2286_v8 = vadd.f32 1e-06, %v2270_v33  ;;  %v4960_v33 = vld [vmem:[#allocation6_spill] sm:$0xff] }
 0x2f9   : > { %3426 = vrsqrt.f32 %v2279_v16  ;;  %v2275_v7 = vmul.f32 0.0026041667, %v2256_v49  ;;  %v2212_v35 = vpop.xlane.xlu1 %2211 }
 0x2fa   : > { %3428 = vrsqrt.f32 %v2286_v8  ;;  %v2264_v14 = vmul.f32 0.0026041667, %v2212_v35 }
 0x2fb   : > { %v3421_v53 = vpop.eup %3420  ;;  %v2291_v61 = vadd.f32 1e-06, %v2275_v7 }
 0x2fc   : > { %v2248_v18 = vpop.xlane.xlu0 %2247  ;;  %v2340_v48 = vmul.f32 %v3421_v53, %v4957_v54  ;;  %v2339_v22 = vmul.f32 %v3421_v53, %v4958_v59  ;;  %v2341_v41 = vmul.f32 %v3421_v53, %v4407_v40  ;;  %v2280_v50 = vadd.f32 1e-06, %v2264_v14 }
 0x2fd   : > { %3430 = vrsqrt.f32 %v2291_v61  ;;  %v2273_v34 = vmul.f32 0.0026041667, %v2248_v18  ;;  %v2260_v63 = vpop.xlane.xlu1 %2259  ;;  %v4961_v61 = vld [vmem:[#allocation9_spill] sm:$0xff] }
 0x2fe   : > { %v2405_v46 = vmul.f32 %v4606_v31, %v2340_v48  ;;  %v2404_v51 = vmul.f32 %v4609_v57, %v2339_v22  ;;  %v4645_v23 = vmul.f32 %v4558_v27, %v2341_v41  ;;  %3432 = vrsqrt.f32 %v2280_v50 }
 0x2ff   : > { %v3423_v1 = vpop.eup %3422  ;;  %v2289_v36 = vadd.f32 1e-06, %v2273_v34  ;;  %v2276_v37 = vmul.f32 0.0026041667, %v2260_v63 }
 0x300   : > { %v2216_v32 = vpop.xlane.xlu0 %2215  ;;  %v2334_v16 = vmul.f32 %v3423_v1, %v4959_v42  ;;  %v2333_v40 = vmul.f32 %v3423_v1, %v4960_v33  ;;  %v4650_v49 = vadd.f32 %v4612_v47, %v2405_v46  ;;  %v4653_v8 = vadd.f32 %v4617_v28, %v2404_v51  ;;  %v4655_v7 = vpop.eup %3424  ;;  %v4962_v51 = vld [vmem:[#allocation5_spill] sm:$0xff] }
 0x301   : > { %3434 = vrsqrt.f32 %v2289_v36  ;;  %v2292_v35 = vadd.f32 1e-06, %v2276_v37  ;;  %v2265_v53 = vmul.f32 0.0026041667, %v2216_v32  ;;  %v2335_v14 = vmul.f32 %v3423_v1, %v4961_v61  ;;  %v2252_v18 = vpop.xlane.xlu1 %2251  ;;  %v4963_v36 = vld [vmem:[#allocation4_spill] sm:$0xff] }
 0x302   : > { %v2399_v54 = vmul.f32 %v4606_v31, %v2334_v16  ;;  %v2398_v48 = vmul.f32 %v4609_v57, %v2333_v40  ;;  %v2343_v59 = vmul.f32 %v4655_v7, %v4437_v12  ;;  %v2342_v22 = vmul.f32 %v4655_v7, %v4434_v39 }
 0x303   : > { %v3427_v41 = vpop.eup %3426  ;;  %3436 = vrsqrt.f32 %v2292_v35  ;;  %v2281_v50 = vadd.f32 1e-06, %v2265_v53  ;;  %v2274_v34 = vmul.f32 0.0026041667, %v2252_v18  ;;  %v4665_v63 = vmul.f32 %v4558_v27, %v2335_v14 }
 0x304   : > { %v2224_v46 = vpop.xlane.xlu0 %2223  ;;  %v2316_v1 = vmul.f32 %v3427_v41, %v4962_v51  ;;  %v2315_v37 = vmul.f32 %v3427_v41, %v4963_v36  ;;  %v4670_v32 = vadd.f32 %v4612_v47, %v2399_v54  ;;  %v4673_v12 = vadd.f32 %v4617_v28, %v2398_v48  ;;  %v4675_v42 = vpop.eup %3428 }
 0x305   : > { %3438 = vrsqrt.f32 %v2281_v50  ;;  %v2290_v39 = vadd.f32 1e-06, %v2274_v34  ;;  %v2267_v16 = vmul.f32 0.0026041667, %v2224_v46  ;;  %v2408_v33 = vmul.f32 %v4606_v31, %v2343_v59  ;;  %v2220_v40 = vpop.xlane.xlu1 %2219 }
 0x306   : > { %v2381_v35 = vmul.f32 %v4606_v31, %v2316_v1  ;;  %v2380_v53 = vmul.f32 %v4609_v57, %v2315_v37  ;;  %v2337_v61 = vmul.f32 %v4675_v42, %v4427_v25  ;;  %v2336_v14 = vmul.f32 %v4675_v42, %v4424_v17 }
 0x307   : > { %v4684_v18 = vpop.eup %3430  ;;  %3440 = vrsqrt.f32 %v2290_v39  ;;  %v2283_v54 = vadd.f32 1e-06, %v2267_v16  ;;  %v2266_v48 = vmul.f32 0.0026041667, %v2220_v40  ;;  %v4687_v50 = vadd.f32 %v4612_v47, %v2408_v33  ;;  %v4964_v16 = vld [vmem:[#allocation12_spill] sm:$0xff] }
 0x308   : > { %v2446_v59 = vadd.f32 %v4612_v47, %v2381_v35  ;;  %v2445_v34 = vadd.f32 %v4617_v28, %v2380_v53  ;;  %v2402_v46 = vmul.f32 %v4606_v31, %v2337_v61  ;;  %v2401_v51 = vmul.f32 %v4609_v57, %v2336_v14  ;;  %v3433_v25 = vpop.eup %3432 }
 0x309   : > { %3442 = vrsqrt.f32 %v2283_v54  ;;  %v2282_v1 = vadd.f32 1e-06, %v2266_v48  ;;  %v2407_v17 = vmul.f32 %v4609_v57, %v2342_v22  ;;  %v2352_v36 = vmul.f32 %v4684_v18, %v4448_v30  ;;  %v2228_v37 = vpop.xlane.xlu1 %2227 }
 0x30a   : > { %2521 = vxpose.xlu1.b32.cont [3/16] %v2446_v59, 128  ;;  %2489 = vxpose.xlu0.b32.cont [3/16] %v2445_v34, 128  ;;  %v2319_v39 = vmul.f32 %v3433_v25, %v4410_v29  ;;  %v2318_v33 = vmul.f32 %v3433_v25, %v4964_v16  ;;  %v4699_v40 = vadd.f32 %v4612_v47, %v2402_v46  ;;  %v2268_v53 = vmul.f32 0.0026041667, %v2228_v37  ;;  %v4965_v46 = vld [vmem:[#allocation15_spill] sm:$0xff] }
 0x30b   : > { %v4701_v35 = vpop.eup %3434  ;;  %3444 = vrsqrt.f32 %v2282_v1  ;;  %v4704_v61 = vadd.f32 %v4617_v28, %v2401_v51  ;;  %v4707_v22 = vadd.f32 %v4617_v28, %v2407_v17  ;;  %v2417_v34 = vmul.f32 %v4606_v31, %v2352_v36  ;;  %v4966_v1 = vld [vmem:[#allocation8_spill] sm:$0xff] }
 0x30c   : > { %v2384_v30 = vmul.f32 %v4606_v31, %v2319_v39  ;;  %v2383_v14 = vmul.f32 %v4609_v57, %v2318_v33  ;;  %v2346_v29 = vmul.f32 %v4701_v35, %v4473_v43  ;;  %v2345_v54 = vmul.f32 %v4701_v35, %v4470_v0 }
 0x30d   : > { %v4715_v48 = vpop.eup %3436  ;;  %v2284_v59 = vadd.f32 1e-06, %v2268_v53  ;;  %v2351_v51 = vmul.f32 %v4684_v18, %v4965_v46  ;;  %v2317_v17 = vmul.f32 %v3427_v41, %v4966_v1  ;;  %v4726_v0 = vadd.f32 %v4612_v47, %v2417_v34 }
 0x30e   : > { %v2449_v37 = vadd.f32 %v4612_v47, %v2384_v30  ;;  %v2448_v39 = vadd.f32 %v4617_v28, %v2383_v14  ;;  %v2411_v16 = vmul.f32 %v4606_v31, %v2346_v29  ;;  %v2410_v43 = vmul.f32 %v4609_v57, %v2345_v54 }
 0x30f   : > { %v3439_v33 = vpop.eup %3438  ;;  %3446 = vrsqrt.f32 %v2284_v59  ;;  %v2416_v36 = vmul.f32 %v4609_v57, %v2351_v51  ;;  %v2355_v53 = vmul.f32 %v4715_v48, %v4493_v13  ;;  %v2354_v13 = vmul.f32 %v4715_v48, %v4490_v20 }
 0x310   : > { %2522 = vxpose.xlu1.b32.cont [4/16] %v2449_v37, 128  ;;  %2490 = vxpose.xlu0.b32.cont [4/16] %v2448_v39, 128  ;;  %v2322_v41 = vmul.f32 %v3439_v33, %v4464_v10  ;;  %v2321_v30 = vmul.f32 %v3439_v33, %v4455_v6  ;;  %v4734_v14 = vadd.f32 %v4612_v47, %v2411_v16 }
 0x311   : > { %v4736_v29 = vpop.eup %3440  ;;  %v4739_v54 = vadd.f32 %v4617_v28, %v2410_v43  ;;  %v4742_v59 = vadd.f32 %v4617_v28, %v2416_v36  ;;  %v2420_v34 = vmul.f32 %v4606_v31, %v2355_v53  ;;  %v2419_v39 = vmul.f32 %v4609_v57, %v2354_v13  ;;  %v4967_v43 = vld [vmem:[#allocation13_spill] sm:$0xff] }
 0x312   : > { %v2387_v10 = vmul.f32 %v4606_v31, %v2322_v41  ;;  %v2386_v6 = vmul.f32 %v4609_v57, %v2321_v30  ;;  %v2349_v46 = vmul.f32 %v4736_v29, %v4508_v9  ;;  %v2348_v51 = vmul.f32 %v4736_v29, %v4505_v45 }
 0x313   : > { %v3443_v1 = vpop.eup %3442  ;;  %v4754_v37 = vadd.f32 %v4612_v47, %v2420_v34  ;;  %v2382_v16 = vmul.f32 %v4558_v27, %v2317_v17  ;;  %v2320_v20 = vmul.f32 %v3433_v25, %v4967_v43  ;;  %v4766_v60 = vadd.f32 %v4617_v28, %v2419_v39 }
 0x314   : > { %v2452_v36 = vadd.f32 %v4612_v47, %v2387_v10  ;;  %v2451_v53 = vadd.f32 %v4617_v28, %v2386_v6  ;;  %v2328_v41 = vmul.f32 %v3443_v1, %v4522_v11  ;;  %v2327_v9 = vmul.f32 %v3443_v1, %v4519_v62 }
 0x315   : > { %v3445_v30 = vpop.eup %3444  ;;  %v2414_v45 = vmul.f32 %v4606_v31, %v2349_v46  ;;  %v2413_v34 = vmul.f32 %v4609_v57, %v2348_v51  ;;  %v4769_v17 = vadd.f32 %v4561_v5, %v2382_v16  ;;  %v2385_v46 = vmul.f32 %v4558_v27, %v2320_v20 }
 0x316   : > { %2523 = vxpose.xlu1.b32.cont [5/16] %v2452_v36, 128  ;;  %2491 = vxpose.xlu0.b32.cont [5/16] %v2451_v53, 128  ;;  %v2325_v25 = vmul.f32 %v3445_v30, %v4546_v52  ;;  %v2324_v13 = vmul.f32 %v3445_v30, %v4543_v58  ;;  %v2393_v11 = vmul.f32 %v4606_v31, %v2328_v41 }
 0x317   : > { %v2392_v62 = vmul.f32 %v4609_v57, %v2327_v9  ;;  %v4776_v10 = vadd.f32 %v4612_v47, %v2414_v45  ;;  %v4779_v6 = vadd.f32 %v4617_v28, %v2413_v34  ;;  %v2323_v58 = vmul.f32 %v3439_v33, %v4482_v19 }
 0x318   : > { %v2390_v51 = vmul.f32 %v4606_v31, %v2325_v25  ;;  %v2389_v39 = vmul.f32 %v4609_v57, %v2324_v13  ;;  %v2458_v52 = vadd.f32 %v4612_v47, %v2393_v11  ;;  %v4788_v36 = vadd.f32 %v4561_v5, %v2385_v46  ;;  %v4968_v46 = vld [vmem:[#allocation14_spill] sm:$0xff] }
 0x319   : > { %v3447_v16 = vpop.eup %3446  ;;  %v2457_v43 = vadd.f32 %v4617_v28, %v2392_v62  ;;  %v2326_v53 = vmul.f32 %v3445_v30, %v4586_v44  ;;  %v2329_v41 = vmul.f32 %v3443_v1, %v4571_v2  ;;  %v2388_v19 = vmul.f32 %v4558_v27, %v2323_v58 }
 0x31a   : > { %v2455_v20 = vadd.f32 %v4612_v47, %v2390_v51  ;;  %v2454_v9 = vadd.f32 %v4617_v28, %v2389_v39  ;;  %v2331_v45 = vmul.f32 %v3447_v16, %v4583_v3  ;;  %v2330_v34 = vmul.f32 %v3447_v16, %v4580_v56 }
 0x31b   : > { %v2391_v33 = vmul.f32 %v4558_v27, %v2326_v53  ;;  %v2394_v25 = vmul.f32 %v4558_v27, %v2329_v41  ;;  %v2332_v13 = vmul.f32 %v3447_v16, %v4597_v55  ;;  %v2465_v1 = vadd.f32 %v4561_v5, %v4665_v63 }
 0x31c   : > { %2524 = vxpose.xlu1.b32.cont [6/16] %v2455_v20, 128  ;;  %2492 = vxpose.xlu0.b32.cont [6/16] %v2454_v9, 128  ;;  %v2396_v2 = vmul.f32 %v4606_v31, %v2331_v45  ;;  %v2395_v44 = vmul.f32 %v4609_v57, %v2330_v34  ;;  %v2453_v3 = vadd.f32 %v4561_v5, %v2388_v19 }
 0x31d   : > { %v2456_v56 = vadd.f32 %v4561_v5, %v2391_v33  ;;  %v2459_v30 = vadd.f32 %v4561_v5, %v2394_v25  ;;  %v2397_v11 = vmul.f32 %v4558_v27, %v2332_v13  ;;  %v2338_v31 = vmul.f32 %v4675_v42, %v4467_v21 }
 0x31e   : > { %v2461_v62 = vadd.f32 %v4612_v47, %v2396_v2  ;;  %v2460_v55 = vadd.f32 %v4617_v28, %v2395_v44  ;;  %v2471_v57 = vadd.f32 %v4561_v5, %v4645_v23  ;;  %v2344_v51 = vmul.f32 %v4655_v7, %v4968_v46 }
 0x31f   : > { %v2462_v63 = vadd.f32 %v4561_v5, %v2397_v11  ;;  %v2347_v39 = vmul.f32 %v4701_v35, %v4502_v4  ;;  %v2350_v58 = vmul.f32 %v4736_v29, %v4564_v24  ;;  %v2403_v47 = vmul.f32 %v4558_v27, %v2338_v31 }
 0x320   : > { %2525 = vxpose.xlu1.b32.cont [7/16] %v2458_v52, 128  ;;  %2493 = vxpose.xlu0.b32.cont [7/16] %v2457_v43, 128  ;;  %v2353_v21 = vmul.f32 %v4684_v18, %v4486_v38  ;;  %v2356_v28 = vmul.f32 %v4715_v48, %v4529_v26  ;;  %v2409_v23 = vmul.f32 %v4558_v27, %v2344_v51 }
 0x321   : > { %v2412_v7 = vmul.f32 %v4558_v27, %v2347_v39  ;;  %v2415_v42 = vmul.f32 %v4558_v27, %v2350_v58  ;;  %v2468_v4 = vadd.f32 %v4561_v5, %v2403_v47 }
 0x322   : > { %v2418_v24 = vmul.f32 %v4558_v27, %v2353_v21  ;;  %v2421_v35 = vmul.f32 %v4558_v27, %v2356_v28  ;;  %v2474_v29 = vadd.f32 %v4561_v5, %v2409_v23  ;;  %v4969_v27 = vld [vmem:[#allocation2_spill] sm:$0xff] }
 0x323   : > { %v2477_v52 = vadd.f32 %v4561_v5, %v2412_v7  ;;  %v2480_v38 = vadd.f32 %v4561_v5, %v2415_v42 }
 0x324   : > { %2526 = vxpose.xlu1.b32.cont [8/16] %v2461_v62, 128  ;;  %2494 = vxpose.xlu0.b32.cont [8/16] %v2460_v55, 128  ;;  %v2483_v26 = vadd.f32 %v4561_v5, %v2418_v24  ;;  %v2486_v18 = vadd.f32 %v4561_v5, %v2421_v35 }
 0x328   : > { %2527 = vxpose.xlu1.b32.cont [9/16] %v4670_v32, 128  ;;  %2495 = vxpose.xlu0.b32.cont [9/16] %v4673_v12, 128 }
 0x32c   : > { %2528 = vxpose.xlu1.b32.cont [10/16] %v4699_v40, 128  ;;  %2496 = vxpose.xlu0.b32.cont [10/16] %v4704_v61, 128 }
 0x330   : > { %2529 = vxpose.xlu1.b32.cont [11/16] %v4650_v49, 128  ;;  %2497 = vxpose.xlu0.b32.cont [11/16] %v4653_v8, 128 }
 0x334   : > { %2530 = vxpose.xlu1.b32.cont [12/16] %v4687_v50, 128  ;;  %2498 = vxpose.xlu0.b32.cont [12/16] %v4707_v22, 128 }
 0x338   : > { %2531 = vxpose.xlu1.b32.cont [13/16] %v4734_v14, 128  ;;  %2499 = vxpose.xlu0.b32.cont [13/16] %v4739_v54, 128 }
 0x33c   : > { %2532 = vxpose.xlu1.b32.cont [14/16] %v4776_v10, 128  ;;  %2500 = vxpose.xlu0.b32.cont [14/16] %v4779_v6, 128 }
 0x340   : > { %2533 = vxpose.xlu1.b32.cont [15/16] %v4726_v0, 128  ;;  %2501 = vxpose.xlu0.b32.cont [15/16] %v4742_v59, 128 }
 0x344   : > { %2534 = vxpose.xlu1.b32.end [16/16] %v4754_v37, 128  ;;  %2502 = vxpose.xlu0.b32.end [16/16] %v4766_v60, 128 }
 0x348   : > { %2551 = vxpose.xlu0.b32.start [1/16] %v4626_v15, 128 }
 0x34c   : > { %2552 = vxpose.xlu0.b32.cont [2/16] %v4969_v27, 128 }
 0x350   : > { %2553 = vxpose.xlu0.b32.cont [3/16] %v4769_v17, 128 }
 0x354   : > { %2554 = vxpose.xlu0.b32.cont [4/16] %v4788_v36, 128 }
 0x358   : > { %2555 = vxpose.xlu0.b32.cont [5/16] %v2453_v3, 128 }
 0x35c   : > { %2556 = vxpose.xlu0.b32.cont [6/16] %v2456_v56, 128 }
 0x360   : > { %2557 = vxpose.xlu0.b32.cont [7/16] %v2459_v30, 128 }
 0x364   : > { %2558 = vxpose.xlu0.b32.cont [8/16] %v2462_v63, 128 }
 0x368   : > { %2559 = vxpose.xlu0.b32.cont [9/16] %v2465_v1, 128 }
 0x36c   : > { %2560 = vxpose.xlu0.b32.cont [10/16] %v2468_v4, 128 }
 0x370   : > { %2561 = vxpose.xlu0.b32.cont [11/16] %v2471_v57, 128 }
 0x374   : > { %2562 = vxpose.xlu0.b32.cont [12/16] %v2474_v29, 128 }
 0x378   : > { %2563 = vxpose.xlu0.b32.cont [13/16] %v2477_v52, 128 }
 0x37c   : > { %2564 = vxpose.xlu0.b32.cont [14/16] %v2480_v38, 128 }
 0x380   : > { %2565 = vxpose.xlu0.b32.cont [15/16] %v2483_v26, 128 }
 0x384   : > { %2566 = vxpose.xlu0.b32.end [16/16] %v2486_v18, 128 }
 0x388   : > { %v2503_v5 = vpop.trf.xlu0  ;;  %v2535_v15 = vpop.trf.xlu1 }
 0x389   : > { %2583 = vst [vmem:[%s4861_s13] sm:$0xff] %v2503_v5  ;;  %2599 = vst [vmem:[%s4861_s13 + $0x80] sm:$0xff] %v2535_v15 }
 0x38c   : > { %v2504_v60 = vpop.trf.xlu0  ;;  %v2536_v49 = vpop.trf.xlu1 }
 0x38d   : > { %2584 = vst [vmem:[%s4861_s13 + $0x8] sm:$0xff] %v2504_v60  ;;  %2600 = vst [vmem:[%s4861_s13 + $0x88] sm:$0xff] %v2536_v49 }
 0x390   : > { %v2505_v8 = vpop.trf.xlu0  ;;  %v2537_v32 = vpop.trf.xlu1 }
 0x391   : > { %2585 = vst [vmem:[%s4861_s13 + $0x10] sm:$0xff] %v2505_v8  ;;  %2601 = vst [vmem:[%s4861_s13 + $0x90] sm:$0xff] %v2537_v32 }
 0x394   : > { %v2506_v12 = vpop.trf.xlu0  ;;  %v2538_v50 = vpop.trf.xlu1 }
 0x395   : > { %2586 = vst [vmem:[%s4861_s13 + $0x18] sm:$0xff] %v2506_v12  ;;  %2602 = vst [vmem:[%s4861_s13 + $0x98] sm:$0xff] %v2538_v50 }
 0x398   : > { %v2507_v40 = vpop.trf.xlu0  ;;  %v2539_v61 = vpop.trf.xlu1 }
 0x399   : > { %2587 = vst [vmem:[%s4861_s13 + $0x20] sm:$0xff] %v2507_v40  ;;  %2603 = vst [vmem:[%s4861_s13 + $0xa0] sm:$0xff] %v2539_v61 }
 0x39c   : > { %v2508_v22 = vpop.trf.xlu0  ;;  %v2540_v48 = vpop.trf.xlu1 }
 0x39d   : > { %2588 = vst [vmem:[%s4861_s13 + $0x28] sm:$0xff] %v2508_v22  ;;  %2604 = vst [vmem:[%s4861_s13 + $0xa8] sm:$0xff] %v2540_v48 }
 0x3a0   : > { %v2509_v0 = vpop.trf.xlu0  ;;  %v2541_v14 = vpop.trf.xlu1 }
 0x3a1   : > { %2589 = vst [vmem:[%s4861_s13 + $0x30] sm:$0xff] %v2509_v0  ;;  %2605 = vst [vmem:[%s4861_s13 + $0xb0] sm:$0xff] %v2541_v14 }
 0x3a4   : > { %v2510_v54 = vpop.trf.xlu0  ;;  %v2542_v59 = vpop.trf.xlu1 }
 0x3a5   : > { %2590 = vst [vmem:[%s4861_s13 + $0x38] sm:$0xff] %v2510_v54  ;;  %2606 = vst [vmem:[%s4861_s13 + $0xb8] sm:$0xff] %v2542_v59 }
 0x3a8   : > { %v2511_v37 = vpop.trf.xlu0  ;;  %v2543_v17 = vpop.trf.xlu1 }
 0x3a9   : > { %2591 = vst [vmem:[%s4861_s13 + $0x40] sm:$0xff] %v2511_v37  ;;  %2607 = vst [vmem:[%s4861_s13 + $0xc0] sm:$0xff] %v2543_v17 }
 0x3ac   : > { %v2512_v10 = vpop.trf.xlu0  ;;  %v2544_v6 = vpop.trf.xlu1 }
 0x3ad   : > { %2592 = vst [vmem:[%s4861_s13 + $0x48] sm:$0xff] %v2512_v10  ;;  %2608 = vst [vmem:[%s4861_s13 + $0xc8] sm:$0xff] %v2544_v6 }
 0x3b0   : > { %v2513_v16 = vpop.trf.xlu0  ;;  %v2545_v43 = vpop.trf.xlu1 }
 0x3b1   : > { %2593 = vst [vmem:[%s4861_s13 + $0x50] sm:$0xff] %v2513_v16  ;;  %2609 = vst [vmem:[%s4861_s13 + $0xd0] sm:$0xff] %v2545_v43 }
 0x3b4   : > { %v2514_v36 = vpop.trf.xlu0  ;;  %v2546_v53 = vpop.trf.xlu1 }
 0x3b5   : > { %2594 = vst [vmem:[%s4861_s13 + $0x58] sm:$0xff] %v2514_v36  ;;  %2610 = vst [vmem:[%s4861_s13 + $0xd8] sm:$0xff] %v2546_v53 }
 0x3b8   : > { %v2515_v41 = vpop.trf.xlu0  ;;  %v2547_v20 = vpop.trf.xlu1 }
 0x3b9   : > { %2595 = vst [vmem:[%s4861_s13 + $0x60] sm:$0xff] %v2515_v41  ;;  %2611 = vst [vmem:[%s4861_s13 + $0xe0] sm:$0xff] %v2547_v20 }
 0x3bc   : > { %v2516_v9 = vpop.trf.xlu0  ;;  %v2548_v45 = vpop.trf.xlu1 }
 0x3bd   : > { %2596 = vst [vmem:[%s4861_s13 + $0x68] sm:$0xff] %v2516_v9  ;;  %2612 = vst [vmem:[%s4861_s13 + $0xe8] sm:$0xff] %v2548_v45 }
 0x3c0   : > { %v2517_v34 = vpop.trf.xlu0  ;;  %v2549_v19 = vpop.trf.xlu1 }
 0x3c1   : > { %2597 = vst [vmem:[%s4861_s13 + $0x70] sm:$0xff] %v2517_v34  ;;  %2613 = vst [vmem:[%s4861_s13 + $0xf0] sm:$0xff] %v2549_v19 }
 0x3c4   : > { %v2518_v33 = vpop.trf.xlu0  ;;  %v2550_v25 = vpop.trf.xlu1 }
 0x3c5   : > { %2598 = vst [vmem:[%s4861_s13 + $0x78] sm:$0xff] %v2518_v33  ;;  %2614 = vst [vmem:[%s4861_s13 + $0xf8] sm:$0xff] %v2550_v25 }
 0x3c8   : > { %v2567_v13 = vpop.trf.xlu0 }
 0x3c9   : > { %2615 = vst [vmem:[%s4861_s13 + $0x100] sm:$0xff] %v2567_v13 }
 0x3cc   : > { %v2568_v2 = vpop.trf.xlu0 }
 0x3cd   : > { %2616 = vst [vmem:[%s4861_s13 + $0x108] sm:$0xff] %v2568_v2 }
 0x3d0   : > { %v2569_v44 = vpop.trf.xlu0 }
 0x3d1   : > { %2617 = vst [vmem:[%s4861_s13 + $0x110] sm:$0xff] %v2569_v44 }
 0x3d4   : > { %v2570_v1 = vpop.trf.xlu0 }
 0x3d5   : > { %2618 = vst [vmem:[%s4861_s13 + $0x118] sm:$0xff] %v2570_v1 }
 0x3d8   : > { %v2571_v3 = vpop.trf.xlu0 }
 0x3d9   : > { %2619 = vst [vmem:[%s4861_s13 + $0x120] sm:$0xff] %v2571_v3 }
 0x3dc   : > { %v2572_v56 = vpop.trf.xlu0 }
 0x3dd   : > { %2620 = vst [vmem:[%s4861_s13 + $0x128] sm:$0xff] %v2572_v56 }
 0x3e0   : > { %v2573_v30 = vpop.trf.xlu0 }
 0x3e1   : > { %2621 = vst [vmem:[%s4861_s13 + $0x130] sm:$0xff] %v2573_v30 }
 0x3e4   : > { %v2574_v11 = vpop.trf.xlu0 }
 0x3e5   : > { %2622 = vst [vmem:[%s4861_s13 + $0x138] sm:$0xff] %v2574_v11 }
 0x3e8   : > { %v2575_v62 = vpop.trf.xlu0 }
 0x3e9   : > { %2623 = vst [vmem:[%s4861_s13 + $0x140] sm:$0xff] %v2575_v62 }
 0x3ec   : > { %v2576_v55 = vpop.trf.xlu0 }
 0x3ed   : > { %2624 = vst [vmem:[%s4861_s13 + $0x148] sm:$0xff] %v2576_v55 }
 0x3f0   : > { %v2577_v31 = vpop.trf.xlu0 }
 0x3f1   : > { %2625 = vst [vmem:[%s4861_s13 + $0x150] sm:$0xff] %v2577_v31 }
 0x3f4   : > { %v2578_v57 = vpop.trf.xlu0 }
 0x3f5   : > { %2626 = vst [vmem:[%s4861_s13 + $0x158] sm:$0xff] %v2578_v57 }
 0x3f8   : > { %v2579_v63 = vpop.trf.xlu0 }
 0x3f9   : > { %2627 = vst [vmem:[%s4861_s13 + $0x160] sm:$0xff] %v2579_v63 }
 0x3fc   : > { %v2580_v46 = vpop.trf.xlu0 }
 0x3fd   : > { %2628 = vst [vmem:[%s4861_s13 + $0x168] sm:$0xff] %v2580_v46 }
 0x400   : > { %v2581_v51 = vpop.trf.xlu0 }
 0x401   : > { %2629 = vst [vmem:[%s4861_s13 + $0x170] sm:$0xff] %v2581_v51 }
 0x404   : > { %v2582_v39 = vpop.trf.xlu0 }
 0x405   : > { %2630 = vst [vmem:[%s4861_s13 + $0x178] sm:$0xff] %v2582_v39 }
 0x406 PF: > { %s15_s20 = sadd.s32 1, %s3470_s20   ;;  %s4970_s18 = smov %s3466_s19 }
 0x407   : > { %p12_p5 = scmp.ge.s32.totalorder %s15_s20, 4   ;;  %s4971_s19 = smov %s4973_s21 }
 0x409   :  { %14 = sbr.rel (!%p12_p5) target bundleno = 2 (0x2), region = 73 }

</bundles_post_ra>
